<compile_context>
chip_gen: v7x
topology: tpu7x:2x2x1
jax: 0.10.0
libtpu: 0.0.40
codegen_flags: <defaults>
</compile_context>

<pallas_src>
import math

import numpy as np
import jax
import jax.numpy as jnp
from jax.experimental import pallas as pl
from jax.experimental.pallas import tpu as pltpu

EPS = 1e-5  # nn.GroupNorm default


def _round_up(x: int, m: int) -> int:
    return (x + m - 1) // m * m


def _vmem_capacity_bytes() -> int:
    try:
        info = pltpu.get_tpu_info()
        cap = int(getattr(info, "vmem_capacity_bytes", 0) or 0)
        if cap > 0:
            return cap
    except Exception:
        pass
    return 128 * 1024 * 1024


_ROLL_MODE = None


def _probe_roll_mode() -> int:
    """Detect pltpu.roll's shift convention with a tiny one-off kernel.
    +1: jnp.roll convention (out[i] = x[(i - shift) % L]);
    -1: flipped convention; 0: roll unusable -> fall back to sliced loads."""
    global _ROLL_MODE
    if _ROLL_MODE is not None:
        return _ROLL_MODE
    try:
        def k(x_ref, o_ref):
            o_ref[...] = pltpu.roll(x_ref[...], 127, axis=1)

        x = jnp.tile(jnp.arange(128, dtype=jnp.float32)[None, :], (8, 1))
        y = np.asarray(pl.pallas_call(
            k, out_shape=jax.ShapeDtypeStruct((8, 128), jnp.float32))(x))
        v = float(y[0, 0])
        if v == 1.0:          # out[0] == x[1]  -> jnp.roll convention
            _ROLL_MODE = 1
        elif v == 127.0:      # out[0] == x[127] -> flipped
            _ROLL_MODE = -1
        else:
            _ROLL_MODE = 0
    except Exception:
        _ROLL_MODE = 0
    return _ROLL_MODE


def _plan_tiling(N, Cout, cpg, Cin_p, Lin, Lpad, out_itemsize):
    """Generation-aware choice of Cout tile, lane chunk, tap stacking, grid
    order and scoped-VMEM limit."""
    cap = _vmem_capacity_bytes()
    vmem_limit = max(32 << 20, min(int(cap * 0.6), 96 << 20))
    budget = vmem_limit - (4 << 20)          # slack for compiler scratch

    # lane chunk: multiple of 128, >= 2048 lanes, at most ~16 chunks (static)
    Lchunk = min(Lpad, max(2048, _round_up(-(-Lpad // 16), 128)))

    # taps stacked per MXU matmul: bound the (tpc*Cin_p, Lchunk) bf16 temp
    tpc = 1
    for t in (9, 3):
        if t * Cin_p * Lchunk * 2 <= (2 << 20):
            tpc = t
            break

    x_bytes = Cin_p * Lin * 2                # per-sample bf16 padded image

    def est(Tc):
        return (2 * x_bytes                          # input (double-buffered)
                + 2 * Tc * 9 * Cin_p * 2             # weight tile
                + 2 * Tc * Lpad * out_itemsize       # output tile
                + Tc * Lpad * 4                      # f32 accumulator scratch
                + 2 * tpc * Cin_p * Lchunk * 2       # tap-stack temporary
                + Lpad * 8 + Tc * 64)                # mask + per-channel vecs

    # Tc: multiple of cpg and 16 (bf16 packing), as large as fits, cap 256
    step = cpg * 16 // math.gcd(cpg, 16)
    cands = [t for t in range(step, Cout + 1, step) if Cout % t == 0]
    if not cands:
        cands = [Cout]
    cands = [t for t in cands if t <= 256] or [min(cands)]
    fitting = [t for t in cands if est(t) <= budget]
    Tc = max(fitting) if fitting else min(cands)
    # TODO(synk): if even the smallest tile overflows the budget (very large
    # H*W), a two-pass spatially-tiled GroupNorm would be needed.

    nc = Cout // Tc
    w_tile_bytes = Tc * 9 * Cin_p * 2
    redundant_n_outer = (N - 1) * nc * w_tile_bytes if nc > 1 else 0
    redundant_c_outer = (nc - 1) * N * x_bytes if N > 1 else 0
    n_outer = redundant_n_outer <= redundant_c_outer

    vmem_limit = min(int(cap * 0.85), max(vmem_limit, est(Tc) + (8 << 20)))
    return Tc, Lchunk, tpc, n_outer, int(vmem_limit)


def make_block_kernel(Wp, Lpad, Lchunk, tpc, roll_mode, n_valid, inv_n,
                      has_scale_shift, out_dtype):
    n_kchunks = 9 // tpc
    lane_starts = list(range(0, Lpad, Lchunk))
    use_roll = (len(lane_starts) == 1) and roll_mode != 0

    def kernel(x_ref, w_ref, b_ref, gamma_ref, beta_ref, mask_ref,
               red_ref, scat_ref, *rest):
        if has_scale_shift:
            scale_ref, shift_ref, o_ref, acc_ref = rest
        else:
            o_ref, acc_ref = rest
        Cin_p = x_ref.shape[1]
        Tc = acc_ref.shape[0]

        sum_c = jnp.zeros((Tc, 1), jnp.float32)
        sumsq_c = jnp.zeros((Tc, 1), jnp.float32)

        # ---- 3x3 conv (pad=1, bias folded below) + masked stats, per chunk ----
        for ls in lane_starts:
            Lc = min(Lchunk, Lpad - ls)
            bases = {}

            def tap(t, ls=ls, Lc=Lc, bases=bases):
                dy, dx = divmod(t, 3)
                if use_roll:
                    if dy not in bases:
                        bases[dy] = x_ref[0, :, dy * Wp + ls: dy * Wp + ls + Lc]
                    if dx == 0:
                        return bases[dy]
                    shift = (Lc - dx) if roll_mode > 0 else dx
                    # circular wrap only touches discarded pad/tail columns
                    return pltpu.roll(bases[dy], shift, axis=1)
                off = dy * Wp + dx + ls
                return x_ref[0, :, off: off + Lc]

            acc = None
            for ci in range(n_kchunks):
                taps = [tap(t) for t in range(ci * tpc, (ci + 1) * tpc)]
                patch = taps[0] if tpc == 1 else jnp.concatenate(taps, axis=0)
                w_chunk = w_ref[:, ci * tpc * Cin_p:(ci + 1) * tpc * Cin_p]
                d = jnp.dot(w_chunk, patch, preferred_element_type=jnp.float32)
                acc = d if acc is None else acc + d

            m = mask_ref[:, ls: ls + Lc]                          # (1, Lc)
            masked = acc * m
            sum_c = sum_c + jnp.sum(masked, axis=1, keepdims=True)
            sumsq_c = sumsq_c + jnp.sum(masked * masked, axis=1, keepdims=True)
            acc_ref[:, ls: ls + Lc] = acc

        # ---- GroupNorm statistics (conv bias folded analytically) ----
        b = b_ref[...]                                            # (Tc, 1)
        sum_z = sum_c + b * n_valid
        sumsq_z = sumsq_c + 2.0 * b * sum_c + b * b * n_valid
        g_sum = jnp.dot(red_ref[...], sum_z, preferred_element_type=jnp.float32)
        g_sumsq = jnp.dot(red_ref[...], sumsq_z, preferred_element_type=jnp.float32)
        mu = jnp.dot(scat_ref[...], g_sum, preferred_element_type=jnp.float32) * inv_n
        ex2 = jnp.dot(scat_ref[...], g_sumsq, preferred_element_type=jnp.float32) * inv_n
        var = jnp.maximum(ex2 - mu * mu, 0.0)                     # guard cancellation
        inv = jax.lax.rsqrt(var + EPS)

        # ---- fold bias, GN affine and optional scale_shift into one FMA ----
        ginv = gamma_ref[...] * inv                               # (Tc, 1)
        A = ginv
        B = (b - mu) * ginv + beta_ref[...]
        if has_scale_shift:
            sp1 = scale_ref[0] + 1.0                              # (Tc, 1)
            A = A * sp1
            B = B * sp1 + shift_ref[0]

        # ---- normalize + SiLU, chunked, narrow-dtype writeback ----
        for ls in lane_starts:
            Lc = min(Lchunk, Lpad - ls)
            y = acc_ref[:, ls: ls + Lc] * A + B
            o_ref[0, :, ls: ls + Lc] = (y * jax.nn.sigmoid(y)).astype(out_dtype)

    return kernel


def block_forward(x, w, b, gamma, beta, *, groups, scale_shift=None,
                  compute_dtype=jnp.bfloat16, out_dtype=jnp.bfloat16,
                  crop_output=True):
    """x: (N, Cin, H, W); w: (Cout, Cin, 3, 3); b/gamma/beta: (Cout,).
    scale_shift: optional ((N, Cout), (N, Cout)).  Returns (N, Cout, H, W)."""
    N, Cin, H, W = x.shape
    Cout = w.shape[0]
    assert Cout % groups == 0
    cpg = Cout // groups

    Wp = W + 2
    HWp = H * Wp
    Lpad = _round_up(HWp, 128)                       # lane-dense output blocks

    c_align = 16 if compute_dtype == jnp.bfloat16 else 8
    Cin_p = _round_up(Cin, c_align)

    # one pad builds conv top/left/right padding, bottom pad AND the flat-tail
    # slack so every shifted tap slice of length Lpad stays in bounds
    rows_total = -(-(Lpad + 2 * Wp + 2) // Wp)
    pad_bottom = rows_total - (H + 1)                # >= 2, incl. conv bottom pad
    xp = jnp.pad(x.astype(compute_dtype),
                 ((0, 0), (0, Cin_p - Cin), (1, pad_bottom), (1, 1)))
    Lin = rows_total * Wp
    x_flat = xp.reshape(N, Cin_p, Lin)

    # weights: (Cout, Cin, 3, 3) -> (Cout, 9*Cin_p), tap-major columns
    w_p = jnp.pad(w, ((0, 0), (0, Cin_p - Cin), (0, 0), (0, 0)))
    w2 = jnp.transpose(w_p, (0, 2, 3, 1)).reshape(Cout, 9 * Cin_p).astype(compute_dtype)

    b2 = jnp.reshape(b, (Cout, 1)).astype(jnp.float32)
    g2 = jnp.reshape(gamma, (Cout, 1)).astype(jnp.float32)
    be2 = jnp.reshape(beta, (Cout, 1)).astype(jnp.float32)

    # valid-position mask: drops the 2 wrap columns per row and the Lpad tail
    pos = np.arange(Lpad)
    mask = jnp.asarray(((pos < HWp) & ((pos % Wp) < W))
                       .astype(np.float32).reshape(1, Lpad))

    out_itemsize = np.dtype(out_dtype).itemsize
    Tc, Lchunk, tpc, n_outer, vmem_limit = _plan_tiling(
        N, Cout, cpg, Cin_p, Lin, Lpad, out_itemsize)
    nc = Cout // Tc
    gt = Tc // cpg

    cid = np.arange(Tc) // cpg
    red_np = (cid[None, :] == np.arange(gt)[:, None]).astype(np.float32)
    red_m = jnp.asarray(red_np)                                  # (gt, Tc)
    scat_m = jnp.asarray(np.ascontiguousarray(red_np.T))         # (Tc, gt)

    has_ss = scale_shift is not None
    kernel = make_block_kernel(Wp, Lpad, Lchunk, tpc, _probe_roll_mode(),
                               float(H * W), 1.0 / float(cpg * H * W),
                               has_ss, out_dtype)

    # grid order: keep the bigger operand resident across the inner axis
    if n_outer:
        grid = (N, nc)
        nmap = lambda a, c: a
        cmap = lambda a, c: c
    else:
        grid = (nc, N)
        nmap = lambda a, c: c
        cmap = lambda a, c: a

    inputs = [x_flat, w2, b2, g2, be2, mask, red_m, scat_m]
    if has_ss:
        scale, shift = scale_shift
        inputs += [jnp.reshape(scale, (N, Cout, 1)).astype(jnp.float32),
                   jnp.reshape(shift, (N, Cout, 1)).astype(jnp.float32)]

    def run(single_buffer):
        def spec(shape, imap, sb=False):
            if sb and single_buffer:
                return pl.BlockSpec(shape, imap, pipeline_mode=pl.Buffered(1))
            return pl.BlockSpec(shape, imap)

        in_specs = [
            spec((1, Cin_p, Lin), lambda a, c: (nmap(a, c), 0, 0),
                 sb=(n_outer and nc >= 2)),                        # image
            spec((Tc, 9 * Cin_p), lambda a, c: (cmap(a, c), 0),
                 sb=((not n_outer) and N >= 2)),                   # weights
            spec((Tc, 1), lambda a, c: (cmap(a, c), 0)),           # bias
            spec((Tc, 1), lambda a, c: (cmap(a, c), 0)),           # gamma
            spec((Tc, 1), lambda a, c: (cmap(a, c), 0)),           # beta
            spec((1, Lpad), lambda a, c: (0, 0), sb=True),         # valid mask
            spec((gt, Tc), lambda a, c: (0, 0), sb=True),          # group reduce
            spec((Tc, gt), lambda a, c: (0, 0), sb=True),          # group scatter
        ]
        if has_ss:
            in_specs += [spec((1, Tc, 1), lambda a, c: (nmap(a, c), cmap(a, c), 0)),
                         spec((1, Tc, 1), lambda a, c: (nmap(a, c), cmap(a, c), 0))]

        return pl.pallas_call(
            kernel,
            out_shape=jax.ShapeDtypeStruct((N, Cout, Lpad), out_dtype),
            grid=grid,
            in_specs=in_specs,
            out_specs=pl.BlockSpec((1, Tc, Lpad),
                                   lambda a, c: (nmap(a, c), cmap(a, c), 0)),
            scratch_shapes=[pltpu.VMEM((Tc, Lpad), jnp.float32)],
            compiler_params=pltpu.CompilerParams(
                dimension_semantics=("parallel", "parallel"),
                vmem_limit_bytes=vmem_limit),
        )(*inputs)

    try:
        out_flat = run(single_buffer=True)
    except Exception:
        # pipeline_mode=pl.Buffered(1) unsupported -> plain double-buffered specs
        out_flat = run(single_buffer=False)

    out = out_flat[:, :, :HWp].reshape(N, Cout, H, Wp)
    if crop_output:
        # TODO(synk): strided crop = full HBM->HBM copy; let downstream ops
        # consume the padded (H, W+2) layout (crop_output=False) to avoid it.
        out = out[..., :W]
    return out


def block_reference(x, w, b, gamma, beta, *, groups, scale_shift=None,
                    compute_dtype=jnp.float32):
    """Pure-JAX reference mirroring the PyTorch module (inputs optionally
    rounded to compute_dtype to match the kernel's bf16 fast path)."""
    xc = x.astype(compute_dtype).astype(jnp.float32)
    wc = w.astype(compute_dtype).astype(jnp.float32)
    y = jax.lax.conv_general_dilated(
        xc, wc, (1, 1), "SAME",
        dimension_numbers=("NCHW", "OIHW", "NCHW"),
        precision=jax.lax.Precision.HIGHEST,
    ) + b[None, :, None, None]
    N, C, H, W = y.shape
    yg = y.reshape(N, groups, -1)
    mu = yg.mean(-1, keepdims=True)
    var = ((yg - mu) ** 2).mean(-1, keepdims=True)
    yn = ((yg - mu) / jnp.sqrt(var + EPS)).reshape(N, C, H, W)
    yn = yn * gamma[None, :, None, None] + beta[None, :, None, None]
    if scale_shift is not None:
        scale, shift = scale_shift
        yn = yn * (scale[:, :, None, None] + 1.0) + shift[:, :, None, None]
    return yn * jax.nn.sigmoid(yn)


if __name__ == "__main__":
    # small shapes consistent with Block(dim=4, dim_out=8, groups=4)
    N, Cin, Cout, H, W, groups = 2, 4, 8, 16, 16, 4

    key = jax.random.PRNGKey(0)
    kx, kw, kb, kg, kbe, ksc, ksh = jax.random.split(key, 7)
    x = jax.random.normal(kx, (N, Cin, H, W), jnp.float32)
    w = jax.random.normal(kw, (Cout, Cin, 3, 3), jnp.float32) * 0.2
    b = jax.random.normal(kb, (Cout,), jnp.float32) * 0.1
    gamma = 1.0 + 0.1 * jax.random.normal(kg, (Cout,), jnp.float32)
    beta = 0.1 * jax.random.normal(kbe, (Cout,), jnp.float32)
    scale = 0.5 * jax.random.normal(ksc, (N, Cout), jnp.float32)
    shift = 0.5 * jax.random.normal(ksh, (N, Cout), jnp.float32)

    # with scale_shift
    out = jax.block_until_ready(
        block_forward(x, w, b, gamma, beta, groups=groups,
                      scale_shift=(scale, shift)))
    out_f32 = np.asarray(out.astype(jnp.float32))
    ref_bf16 = np.asarray(block_reference(x, w, b, gamma, beta, groups=groups,
                                          scale_shift=(scale, shift),
                                          compute_dtype=jnp.bfloat16))
    np.testing.assert_allclose(out_f32, ref_bf16, atol=1e-2, rtol=1e-2)
    ref_f32 = np.asarray(block_reference(x, w, b, gamma, beta, groups=groups,
                                         scale_shift=(scale, shift)))
    np.testing.assert_allclose(out_f32, ref_f32, atol=6e-2, rtol=6e-2)

    # without scale_shift
    out0 = jax.block_until_ready(
        block_forward(x, w, b, gamma, beta, groups=groups, scale_shift=None))
    ref0 = np.asarray(block_reference(x, w, b, gamma, beta, groups=groups,
                                      scale_shift=None,
                                      compute_dtype=jnp.bfloat16))
    np.testing.assert_allclose(np.asarray(out0.astype(jnp.float32)), ref0,
                               atol=1e-2, rtol=1e-2)

    print("KERNEL_OK")
</pallas_src>

<mosaic_0001>
module attributes {stable_mosaic.version = 11 : i64} {
  func.func @k(%arg0: memref<8x128xf32, #tpu.memory_space<vmem>>, %arg1: memref<8x128xf32, #tpu.memory_space<vmem>>) attributes {dimension_semantics = [], scalar_prefetch = 0 : i64, scratch_operands = 0 : i64, tpu.core_type = #tpu.core_type<tc>} {
    %c0 = arith.constant 0 : index
    %c0_0 = arith.constant 0 : index
    %0 = vector.load %arg0[%c0, %c0_0] : memref<8x128xf32, #tpu.memory_space<vmem>>, vector<8x128xf32>
    %c127_i32 = arith.constant 127 : i32
    %1 = tpu.dynamic_rotate %0 by %c127_i32 dim 1 : vector<8x128xf32>, i32 -> vector<8x128xf32>
    %c0_1 = arith.constant 0 : index
    %c0_2 = arith.constant 0 : index
    %2 = vector.load %arg1[%c0_1, %c0_2] : memref<8x128xf32, #tpu.memory_space<vmem>>, vector<8x128xf32>
    tpu.vector_store %arg1[%c0_1, %c0_2], %1 {strides = array<i32>} : memref<8x128xf32, #tpu.memory_space<vmem>>, vector<8x128xf32>,
    return
  }
}

module attributes {stable_mosaic.version = 11 : i64} {
  func.func @kernel(%arg0: i32, %arg1: i32, %arg2: memref<1x16x432xbf16, #tpu.memory_space<vmem>>, %arg3: memref<8x144xbf16, #tpu.memory_space<vmem>>, %arg4: memref<8x1xf32, #tpu.memory_space<vmem>>, %arg5: memref<8x1xf32, #tpu.memory_space<vmem>>, %arg6: memref<8x1xf32, #tpu.memory_space<vmem>>, %arg7: memref<1x384xf32, #tpu.memory_space<vmem>>, %arg8: memref<4x8xf32, #tpu.memory_space<vmem>>, %arg9: memref<8x4xf32, #tpu.memory_space<vmem>>, %arg10: memref<1x8x1xf32, #tpu.memory_space<vmem>>, %arg11: memref<1x8x1xf32, #tpu.memory_space<vmem>>, %arg12: memref<1x8x384xbf16, #tpu.memory_space<vmem>>, %arg13: memref<8x384xf32, #tpu.memory_space<vmem>>) attributes {dimension_semantics = [#tpu.dimension_semantics<parallel>, #tpu.dimension_semantics<parallel>], iteration_bounds = array<i64: 2, 1>, scalar_prefetch = 0 : i64, scratch_operands = 1 : i64, tpu.core_type = #tpu.core_type<tc>, window_params = [{transform_indices = @transform_0, window_bounds = array<i64: 1, 16, 432>}, {transform_indices = @transform_1, window_bounds = array<i64: 8, 144>}, {transform_indices = @transform_2, window_bounds = array<i64: 8, 1>}, {transform_indices = @transform_3, window_bounds = array<i64: 8, 1>}, {transform_indices = @transform_4, window_bounds = array<i64: 8, 1>}, {pipeline_mode = #tpu.pipeline_mode<synchronous>, transform_indices = @transform_5, window_bounds = array<i64: 1, 384>}, {pipeline_mode = #tpu.pipeline_mode<synchronous>, transform_indices = @transform_6, window_bounds = array<i64: 4, 8>}, {pipeline_mode = #tpu.pipeline_mode<synchronous>, transform_indices = @transform_7, window_bounds = array<i64: 8, 4>}, {transform_indices = @transform_8, window_bounds = array<i64: 1, 8, 1>}, {transform_indices = @transform_9, window_bounds = array<i64: 1, 8, 1>}, {transform_indices = @transform_10, window_bounds = array<i64: 1, 8, 384>}]} {
    %cst = arith.constant 0.000000e+00 : f32
    %0 = vector.broadcast %cst : f32 to vector<8x1xf32>
    %cst_0 = arith.constant 0.000000e+00 : f32
    %1 = vector.broadcast %cst_0 : f32 to vector<8x1xf32>
    %c0 = arith.constant 0 : index
    %c0_1 = arith.constant 0 : index
    %c0_2 = arith.constant 0 : index
    %2 = vector.load %arg2[%c0, %c0_1, %c0_2] : memref<1x16x432xbf16, #tpu.memory_space<vmem>>, vector<1x16x384xbf16>
    %3 = vector.shape_cast %2 : vector<1x16x384xbf16> to vector<16x384xbf16>
    %c0_3 = arith.constant 0 : index
    %c0_4 = arith.constant 0 : index
    %c1 = arith.constant 1 : index
    %4 = vector.load %arg2[%c0_3, %c0_4, %c1] : memref<1x16x432xbf16, #tpu.memory_space<vmem>>, vector<1x16x384xbf16>
    %5 = vector.shape_cast %4 : vector<1x16x384xbf16> to vector<16x384xbf16>
    %c0_5 = arith.constant 0 : index
    %c0_6 = arith.constant 0 : index
    %c2 = arith.constant 2 : index
    %6 = vector.load %arg2[%c0_5, %c0_6, %c2] : memref<1x16x432xbf16, #tpu.memory_space<vmem>>, vector<1x16x384xbf16>
    %7 = vector.shape_cast %6 : vector<1x16x384xbf16> to vector<16x384xbf16>
    %c0_7 = arith.constant 0 : index
    %c0_8 = arith.constant 0 : index
    %c18 = arith.constant 18 : index
    %8 = vector.load %arg2[%c0_7, %c0_8, %c18] : memref<1x16x432xbf16, #tpu.memory_space<vmem>>, vector<1x16x384xbf16>
    %9 = vector.shape_cast %8 : vector<1x16x384xbf16> to vector<16x384xbf16>
    %c0_9 = arith.constant 0 : index
    %c0_10 = arith.constant 0 : index
    %c19 = arith.constant 19 : index
    %10 = vector.load %arg2[%c0_9, %c0_10, %c19] : memref<1x16x432xbf16, #tpu.memory_space<vmem>>, vector<1x16x384xbf16>
    %11 = vector.shape_cast %10 : vector<1x16x384xbf16> to vector<16x384xbf16>
    %c0_11 = arith.constant 0 : index
    %c0_12 = arith.constant 0 : index
    %c20 = arith.constant 20 : index
    %12 = vector.load %arg2[%c0_11, %c0_12, %c20] : memref<1x16x432xbf16, #tpu.memory_space<vmem>>, vector<1x16x384xbf16>
    %13 = vector.shape_cast %12 : vector<1x16x384xbf16> to vector<16x384xbf16>
    %c0_13 = arith.constant 0 : index
    %c0_14 = arith.constant 0 : index
    %c36 = arith.constant 36 : index
    %14 = vector.load %arg2[%c0_13, %c0_14, %c36] : memref<1x16x432xbf16, #tpu.memory_space<vmem>>, vector<1x16x384xbf16>
    %15 = vector.shape_cast %14 : vector<1x16x384xbf16> to vector<16x384xbf16>
    %c0_15 = arith.constant 0 : index
    %c0_16 = arith.constant 0 : index
    %c37 = arith.constant 37 : index
    %16 = vector.load %arg2[%c0_15, %c0_16, %c37] : memref<1x16x432xbf16, #tpu.memory_space<vmem>>, vector<1x16x384xbf16>
    %17 = vector.shape_cast %16 : vector<1x16x384xbf16> to vector<16x384xbf16>
    %c0_17 = arith.constant 0 : index
    %c0_18 = arith.constant 0 : index
    %c38 = arith.constant 38 : index
    %18 = vector.load %arg2[%c0_17, %c0_18, %c38] : memref<1x16x432xbf16, #tpu.memory_space<vmem>>, vector<1x16x384xbf16>
    %19 = vector.shape_cast %18 : vector<1x16x384xbf16> to vector<16x384xbf16>
    %20 = tpu.concatenate %3, %5, %7, %9, %11, %13, %15, %17, %19 in 0 : vector<16x384xbf16>, vector<16x384xbf16>, vector<16x384xbf16>, vector<16x384xbf16>, vector<16x384xbf16>, vector<16x384xbf16>, vector<16x384xbf16>, vector<16x384xbf16>, vector<16x384xbf16> -> vector<144x384xbf16>
    %c0_19 = arith.constant 0 : index
    %c0_20 = arith.constant 0 : index
    %21 = vector.load %arg3[%c0_19, %c0_20] : memref<8x144xbf16, #tpu.memory_space<vmem>>, vector<8x144xbf16>
    %cst_21 = arith.constant dense<0.000000e+00> : vector<8x384xf32>
    %22 = tpu.matmul %21, %20, %cst_21 {dimension_numbers = #tpu.dot_dimension_numbers<[1], [0], [0], [1], [0, 0, 1, 1], [], []>} : vector<8x144xbf16>, vector<144x384xbf16>, vector<8x384xf32> -> vector<8x384xf32>
    %c0_22 = arith.constant 0 : index
    %c0_23 = arith.constant 0 : index
    %23 = vector.load %arg7[%c0_22, %c0_23] : memref<1x384xf32, #tpu.memory_space<vmem>>, vector<1x384xf32>
    %24 = vector.broadcast %23 : vector<1x384xf32> to vector<8x384xf32>
    %25 = arith.mulf %22, %24 : vector<8x384xf32>
    %cst_24 = arith.constant dense<0.000000e+00> : vector<8xf32>
    %26 = vector.multi_reduction <add>, %25, %cst_24 [1] : vector<8x384xf32> to vector<8xf32>
    %27 = vector.shape_cast %26 : vector<8xf32> to vector<8x1xf32>
    %28 = arith.addf %0, %27 : vector<8x1xf32>
    %29 = arith.mulf %25, %25 : vector<8x384xf32>
    %cst_25 = arith.constant dense<0.000000e+00> : vector<8xf32>
    %30 = vector.multi_reduction <add>, %29, %cst_25 [1] : vector<8x384xf32> to vector<8xf32>
    %31 = vector.shape_cast %30 : vector<8xf32> to vector<8x1xf32>
    %32 = arith.addf %1, %31 : vector<8x1xf32>
    %c0_26 = arith.constant 0 : index
    %c0_27 = arith.constant 0 : index
    %33 = vector.load %arg13[%c0_26, %c0_27] : memref<8x384xf32, #tpu.memory_space<vmem>>, vector<8x384xf32>
    tpu.vector_store %arg13[%c0_26, %c0_27], %22 {strides = array<i32>} : memref<8x384xf32, #tpu.memory_space<vmem>>, vector<8x384xf32>,
    %c0_28 = arith.constant 0 : index
    %c0_29 = arith.constant 0 : index
    %34 = vector.load %arg4[%c0_28, %c0_29] : memref<8x1xf32, #tpu.memory_space<vmem>>, vector<8x1xf32>
    %cst_30 = arith.constant 2.560000e+02 : f32
    %35 = vector.broadcast %cst_30 : f32 to vector<8x1xf32>
    %36 = arith.mulf %34, %35 : vector<8x1xf32>
    %37 = arith.addf %28, %36 : vector<8x1xf32>
    %cst_31 = arith.constant 2.000000e+00 : f32
    %38 = vector.broadcast %cst_31 : f32 to vector<8x1xf32>
    %39 = arith.mulf %38, %34 : vector<8x1xf32>
    %40 = arith.mulf %39, %28 : vector<8x1xf32>
    %41 = arith.addf %32, %40 : vector<8x1xf32>
    %42 = arith.mulf %34, %34 : vector<8x1xf32>
    %cst_32 = arith.constant 2.560000e+02 : f32
    %43 = vector.broadcast %cst_32 : f32 to vector<8x1xf32>
    %44 = arith.mulf %42, %43 : vector<8x1xf32>
    %45 = arith.addf %41, %44 : vector<8x1xf32>
    %c0_33 = arith.constant 0 : index
    %c0_34 = arith.constant 0 : index
    %46 = vector.load %arg8[%c0_33, %c0_34] : memref<4x8xf32, #tpu.memory_space<vmem>>, vector<4x8xf32>
    %cst_35 = arith.constant dense<0.000000e+00> : vector<4x1xf32>
    %47 = tpu.matmul %46, %37, %cst_35 {dimension_numbers = #tpu.dot_dimension_numbers<[1], [0], [0], [1], [0, 0, 1, 1], [], []>} : vector<4x8xf32>, vector<8x1xf32>, vector<4x1xf32> -> vector<4x1xf32>
    %c0_36 = arith.constant 0 : index
    %c0_37 = arith.constant 0 : index
    %48 = vector.load %arg8[%c0_36, %c0_37] : memref<4x8xf32, #tpu.memory_space<vmem>>, vector<4x8xf32>
    %cst_38 = arith.constant dense<0.000000e+00> : vector<4x1xf32>
    %49 = tpu.matmul %48, %45, %cst_38 {dimension_numbers = #tpu.dot_dimension_numbers<[1], [0], [0], [1], [0, 0, 1, 1], [], []>} : vector<4x8xf32>, vector<8x1xf32>, vector<4x1xf32> -> vector<4x1xf32>
    %c0_39 = arith.constant 0 : index
    %c0_40 = arith.constant 0 : index
    %50 = vector.load %arg9[%c0_39, %c0_40] : memref<8x4xf32, #tpu.memory_space<vmem>>, vector<8x4xf32>
    %cst_41 = arith.constant dense<0.000000e+00> : vector<8x1xf32>
    %51 = tpu.matmul %50, %47, %cst_41 {dimension_numbers = #tpu.dot_dimension_numbers<[1], [0], [0], [1], [0, 0, 1, 1], [], []>} : vector<8x4xf32>, vector<4x1xf32>, vector<8x1xf32> -> vector<8x1xf32>
    %cst_42 = arith.constant 0.001953125 : f32
    %52 = vector.broadcast %cst_42 : f32 to vector<8x1xf32>
    %53 = arith.mulf %51, %52 : vector<8x1xf32>
    %c0_43 = arith.constant 0 : index
    %c0_44 = arith.constant 0 : index
    %54 = vector.load %arg9[%c0_43, %c0_44] : memref<8x4xf32, #tpu.memory_space<vmem>>, vector<8x4xf32>
    %cst_45 = arith.constant dense<0.000000e+00> : vector<8x1xf32>
    %55 = tpu.matmul %54, %49, %cst_45 {dimension_numbers = #tpu.dot_dimension_numbers<[1], [0], [0], [1], [0, 0, 1, 1], [], []>} : vector<8x4xf32>, vector<4x1xf32>, vector<8x1xf32> -> vector<8x1xf32>
    %cst_46 = arith.constant 0.001953125 : f32
    %56 = vector.broadcast %cst_46 : f32 to vector<8x1xf32>
    %57 = arith.mulf %55, %56 : vector<8x1xf32>
    %58 = arith.mulf %53, %53 : vector<8x1xf32>
    %59 = arith.subf %57, %58 : vector<8x1xf32>
    %cst_47 = arith.constant 0.000000e+00 : f32
    %60 = vector.broadcast %cst_47 : f32 to vector<8x1xf32>
    %61 = arith.maximumf %59, %60 : vector<8x1xf32>
    %cst_48 = arith.constant 9.99999974E-6 : f32
    %62 = vector.broadcast %cst_48 : f32 to vector<8x1xf32>
    %63 = arith.addf %61, %62 : vector<8x1xf32>
    %64 = math.rsqrt %63 : vector<8x1xf32>
    %c0_49 = arith.constant 0 : index
    %c0_50 = arith.constant 0 : index
    %65 = vector.load %arg5[%c0_49, %c0_50] : memref<8x1xf32, #tpu.memory_space<vmem>>, vector<8x1xf32>
    %66 = arith.mulf %65, %64 : vector<8x1xf32>
    %67 = arith.subf %34, %53 : vector<8x1xf32>
    %68 = arith.mulf %67, %66 : vector<8x1xf32>
    %c0_51 = arith.constant 0 : index
    %c0_52 = arith.constant 0 : index
    %69 = vector.load %arg6[%c0_51, %c0_52] : memref<8x1xf32, #tpu.memory_space<vmem>>, vector<8x1xf32>
    %70 = arith.addf %68, %69 : vector<8x1xf32>
    %c0_53 = arith.constant 0 : index
    %c0_54 = arith.constant 0 : index
    %c0_55 = arith.constant 0 : index
    %71 = vector.load %arg10[%c0_53, %c0_54, %c0_55] : memref<1x8x1xf32, #tpu.memory_space<vmem>>, vector<1x8x1xf32>
    %72 = vector.shape_cast %71 : vector<1x8x1xf32> to vector<8x1xf32>
    %cst_56 = arith.constant 1.000000e+00 : f32
    %73 = vector.broadcast %cst_56 : f32 to vector<8x1xf32>
    %74 = arith.addf %72, %73 : vector<8x1xf32>
    %75 = arith.mulf %66, %74 : vector<8x1xf32>
    %76 = arith.mulf %70, %74 : vector<8x1xf32>
    %c0_57 = arith.constant 0 : index
    %c0_58 = arith.constant 0 : index
    %c0_59 = arith.constant 0 : index
    %77 = vector.load %arg11[%c0_57, %c0_58, %c0_59] : memref<1x8x1xf32, #tpu.memory_space<vmem>>, vector<1x8x1xf32>
    %78 = vector.shape_cast %77 : vector<1x8x1xf32> to vector<8x1xf32>
    %79 = arith.addf %76, %78 : vector<8x1xf32>
    %c0_60 = arith.constant 0 : index
    %c0_61 = arith.constant 0 : index
    %80 = vector.load %arg13[%c0_60, %c0_61] : memref<8x384xf32, #tpu.memory_space<vmem>>, vector<8x384xf32>
    %81 = vector.broadcast %75 : vector<8x1xf32> to vector<8x384xf32>
    %82 = arith.mulf %80, %81 : vector<8x384xf32>
    %83 = vector.broadcast %79 : vector<8x1xf32> to vector<8x384xf32>
    %84 = arith.addf %82, %83 : vector<8x384xf32>
    %85 = arith.negf %84 : vector<8x384xf32>
    %86 = math.exp %85 : vector<8x384xf32>
    %cst_62 = arith.constant 1.000000e+00 : f32
    %87 = vector.broadcast %cst_62 : f32 to vector<8x384xf32>
    %88 = arith.addf %87, %86 : vector<8x384xf32>
    %89 = arith.divf %87, %88 : vector<8x384xf32>
    %90 = arith.mulf %84, %89 : vector<8x384xf32>
    %91 = arith.truncf %90 : vector<8x384xf32> to vector<8x384xbf16>
    %c0_63 = arith.constant 0 : index
    %c0_64 = arith.constant 0 : index
    %c0_65 = arith.constant 0 : index
    %92 = vector.load %arg12[%c0_63, %c0_64, %c0_65] : memref<1x8x384xbf16, #tpu.memory_space<vmem>>, vector<1x8x384xbf16>
    %93 = vector.shape_cast %92 : vector<1x8x384xbf16> to vector<8x384xbf16>
    %94 = vector.shape_cast %91 : vector<8x384xbf16> to vector<1x8x384xbf16>
    tpu.vector_store %arg12[%c0_63, %c0_64, %c0_65], %94 {strides = array<i32>} : memref<1x8x384xbf16, #tpu.memory_space<vmem>>, vector<1x8x384xbf16>,
    return
  }
  func.func @transform_0(%arg0: i32, %arg1: i32) -> (i32, i32, i32) {
    %c0_i32 = arith.constant 0 : i32
    %c0_i32_0 = arith.constant 0 : i32
    %c0_i32_1 = arith.constant 0 : i32
    return %arg0, %c0_i32, %c0_i32_0 : i32, i32, i32
  }
  func.func @transform_1(%arg0: i32, %arg1: i32) -> (i32, i32) {
    %c0_i32 = arith.constant 0 : i32
    %c0_i32_0 = arith.constant 0 : i32
    return %arg1, %c0_i32 : i32, i32
  }
  func.func @transform_2(%arg0: i32, %arg1: i32) -> (i32, i32) {
    %c0_i32 = arith.constant 0 : i32
    %c0_i32_0 = arith.constant 0 : i32
    return %arg1, %c0_i32 : i32, i32
  }
  func.func @transform_3(%arg0: i32, %arg1: i32) -> (i32, i32) {
    %c0_i32 = arith.constant 0 : i32
    %c0_i32_0 = arith.constant 0 : i32
    return %arg1, %c0_i32 : i32, i32
  }
  func.func @transform_4(%arg0: i32, %arg1: i32) -> (i32, i32) {
    %c0_i32 = arith.constant 0 : i32
    %c0_i32_0 = arith.constant 0 : i32
    return %arg1, %c0_i32 : i32, i32
  }
  func.func @transform_5(%arg0: i32, %arg1: i32) -> (i32, i32) {
    %c0_i32 = arith.constant 0 : i32
    %c0_i32_0 = arith.constant 0 : i32
    %c0_i32_1 = arith.constant 0 : i32
    return %c0_i32, %c0_i32_0 : i32, i32
  }
  func.func @transform_6(%arg0: i32, %arg1: i32) -> (i32, i32) {
    %c0_i32 = arith.constant 0 : i32
    %c0_i32_0 = arith.constant 0 : i32
    %c0_i32_1 = arith.constant 0 : i32
    return %c0_i32, %c0_i32_0 : i32, i32
  }
  func.func @transform_7(%arg0: i32, %arg1: i32) -> (i32, i32) {
    %c0_i32 = arith.constant 0 : i32
    %c0_i32_0 = arith.constant 0 : i32
    %c0_i32_1 = arith.constant 0 : i32
    return %c0_i32, %c0_i32_0 : i32, i32
  }
  func.func @transform_8(%arg0: i32, %arg1: i32) -> (i32, i32, i32) {
    %c0_i32 = arith.constant 0 : i32
    %c0_i32_0 = arith.constant 0 : i32
    return %arg0, %arg1, %c0_i32 : i32, i32, i32
  }
  func.func @transform_9(%arg0: i32, %arg1: i32) -> (i32, i32, i32) {
    %c0_i32 = arith.constant 0 : i32
    %c0_i32_0 = arith.constant 0 : i32
    return %arg0, %arg1, %c0_i32 : i32, i32, i32
  }
  func.func @transform_10(%arg0: i32, %arg1: i32) -> (i32, i32, i32) {
    %c0_i32 = arith.constant 0 : i32
    %c0_i32_0 = arith.constant 0 : i32
    return %arg0, %arg1, %c0_i32 : i32, i32, i32
  }
}

module attributes {stable_mosaic.version = 11 : i64} {
  func.func @kernel(%arg0: i32, %arg1: i32, %arg2: memref<1x16x432xbf16, #tpu.memory_space<vmem>>, %arg3: memref<8x144xbf16, #tpu.memory_space<vmem>>, %arg4: memref<8x1xf32, #tpu.memory_space<vmem>>, %arg5: memref<8x1xf32, #tpu.memory_space<vmem>>, %arg6: memref<8x1xf32, #tpu.memory_space<vmem>>, %arg7: memref<1x384xf32, #tpu.memory_space<vmem>>, %arg8: memref<4x8xf32, #tpu.memory_space<vmem>>, %arg9: memref<8x4xf32, #tpu.memory_space<vmem>>, %arg10: memref<1x8x1xf32, #tpu.memory_space<vmem>>, %arg11: memref<1x8x1xf32, #tpu.memory_space<vmem>>, %arg12: memref<1x8x384xbf16, #tpu.memory_space<vmem>>, %arg13: memref<8x384xf32, #tpu.memory_space<vmem>>) attributes {dimension_semantics = [#tpu.dimension_semantics<parallel>, #tpu.dimension_semantics<parallel>], iteration_bounds = array<i64: 2, 1>, scalar_prefetch = 0 : i64, scratch_operands = 1 : i64, tpu.core_type = #tpu.core_type<tc>, window_params = [{transform_indices = @transform_0, window_bounds = array<i64: 1, 16, 432>}, {transform_indices = @transform_1, window_bounds = array<i64: 8, 144>}, {transform_indices = @transform_2, window_bounds = array<i64: 8, 1>}, {transform_indices = @transform_3, window_bounds = array<i64: 8, 1>}, {transform_indices = @transform_4, window_bounds = array<i64: 8, 1>}, {pipeline_mode = #tpu.pipeline_mode<synchronous>, transform_indices = @transform_5, window_bounds = array<i64: 1, 384>}, {pipeline_mode = #tpu.pipeline_mode<synchronous>, transform_indices = @transform_6, window_bounds = array<i64: 4, 8>}, {pipeline_mode = #tpu.pipeline_mode<synchronous>, transform_indices = @transform_7, window_bounds = array<i64: 8, 4>}, {transform_indices = @transform_8, window_bounds = array<i64: 1, 8, 1>}, {transform_indices = @transform_9, window_bounds = array<i64: 1, 8, 1>}, {transform_indices = @transform_10, window_bounds = array<i64: 1, 8, 384>}]} {
    %cst = arith.constant 0.000000e+00 : f32
    %0 = vector.broadcast %cst : f32 to vector<8x1xf32>
    %cst_0 = arith.constant 0.000000e+00 : f32
    %1 = vector.broadcast %cst_0 : f32 to vector<8x1xf32>
    %c0 = arith.constant 0 : index
    %c0_1 = arith.constant 0 : index
    %c0_2 = arith.constant 0 : index
    %2 = vector.load %arg2[%c0, %c0_1, %c0_2] : memref<1x16x432xbf16, #tpu.memory_space<vmem>>, vector<1x16x384xbf16>
    %3 = vector.shape_cast %2 : vector<1x16x384xbf16> to vector<16x384xbf16>
    %c0_3 = arith.constant 0 : index
    %c0_4 = arith.constant 0 : index
    %c1 = arith.constant 1 : index
    %4 = vector.load %arg2[%c0_3, %c0_4, %c1] : memref<1x16x432xbf16, #tpu.memory_space<vmem>>, vector<1x16x384xbf16>
    %5 = vector.shape_cast %4 : vector<1x16x384xbf16> to vector<16x384xbf16>
    %c0_5 = arith.constant 0 : index
    %c0_6 = arith.constant 0 : index
    %c2 = arith.constant 2 : index
    %6 = vector.load %arg2[%c0_5, %c0_6, %c2] : memref<1x16x432xbf16, #tpu.memory_space<vmem>>, vector<1x16x384xbf16>
    %7 = vector.shape_cast %6 : vector<1x16x384xbf16> to vector<16x384xbf16>
    %c0_7 = arith.constant 0 : index
    %c0_8 = arith.constant 0 : index
    %c18 = arith.constant 18 : index
    %8 = vector.load %arg2[%c0_7, %c0_8, %c18] : memref<1x16x432xbf16, #tpu.memory_space<vmem>>, vector<1x16x384xbf16>
    %9 = vector.shape_cast %8 : vector<1x16x384xbf16> to vector<16x384xbf16>
    %c0_9 = arith.constant 0 : index
    %c0_10 = arith.constant 0 : index
    %c19 = arith.constant 19 : index
    %10 = vector.load %arg2[%c0_9, %c0_10, %c19] : memref<1x16x432xbf16, #tpu.memory_space<vmem>>, vector<1x16x384xbf16>
    %11 = vector.shape_cast %10 : vector<1x16x384xbf16> to vector<16x384xbf16>
    %c0_11 = arith.constant 0 : index
    %c0_12 = arith.constant 0 : index
    %c20 = arith.constant 20 : index
    %12 = vector.load %arg2[%c0_11, %c0_12, %c20] : memref<1x16x432xbf16, #tpu.memory_space<vmem>>, vector<1x16x384xbf16>
    %13 = vector.shape_cast %12 : vector<1x16x384xbf16> to vector<16x384xbf16>
    %c0_13 = arith.constant 0 : index
    %c0_14 = arith.constant 0 : index
    %c36 = arith.constant 36 : index
    %14 = vector.load %arg2[%c0_13, %c0_14, %c36] : memref<1x16x432xbf16, #tpu.memory_space<vmem>>, vector<1x16x384xbf16>
    %15 = vector.shape_cast %14 : vector<1x16x384xbf16> to vector<16x384xbf16>
    %c0_15 = arith.constant 0 : index
    %c0_16 = arith.constant 0 : index
    %c37 = arith.constant 37 : index
    %16 = vector.load %arg2[%c0_15, %c0_16, %c37] : memref<1x16x432xbf16, #tpu.memory_space<vmem>>, vector<1x16x384xbf16>
    %17 = vector.shape_cast %16 : vector<1x16x384xbf16> to vector<16x384xbf16>
    %c0_17 = arith.constant 0 : index
    %c0_18 = arith.constant 0 : index
    %c38 = arith.constant 38 : index
    %18 = vector.load %arg2[%c0_17, %c0_18, %c38] : memref<1x16x432xbf16, #tpu.memory_space<vmem>>, vector<1x16x384xbf16>
    %19 = vector.shape_cast %18 : vector<1x16x384xbf16> to vector<16x384xbf16>
    %20 = tpu.concatenate %3, %5, %7, %9, %11, %13, %15, %17, %19 in 0 : vector<16x384xbf16>, vector<16x384xbf16>, vector<16x384xbf16>, vector<16x384xbf16>, vector<16x384xbf16>, vector<16x384xbf16>, vector<16x384xbf16>, vector<16x384xbf16>, vector<16x384xbf16> -> vector<144x384xbf16>
    %c0_19 = arith.constant 0 : index
    %c0_20 = arith.constant 0 : index
    %21 = vector.load %arg3[%c0_19, %c0_20] : memref<8x144xbf16, #tpu.memory_space<vmem>>, vector<8x144xbf16>
    %cst_21 = arith.constant dense<0.000000e+00> : vector<8x384xf32>
    %22 = tpu.matmul %21, %20, %cst_21 {dimension_numbers = #tpu.dot_dimension_numbers<[1], [0], [0], [1], [0, 0, 1, 1], [], []>} : vector<8x144xbf16>, vector<144x384xbf16>, vector<8x384xf32> -> vector<8x384xf32>
    %c0_22 = arith.constant 0 : index
    %c0_23 = arith.constant 0 : index
    %23 = vector.load %arg7[%c0_22, %c0_23] : memref<1x384xf32, #tpu.memory_space<vmem>>, vector<1x384xf32>
    %24 = vector.broadcast %23 : vector<1x384xf32> to vector<8x384xf32>
    %25 = arith.mulf %22, %24 : vector<8x384xf32>
    %cst_24 = arith.constant dense<0.000000e+00> : vector<8xf32>
    %26 = vector.multi_reduction <add>, %25, %cst_24 [1] : vector<8x384xf32> to vector<8xf32>
    %27 = vector.shape_cast %26 : vector<8xf32> to vector<8x1xf32>
    %28 = arith.addf %0, %27 : vector<8x1xf32>
    %29 = arith.mulf %25, %25 : vector<8x384xf32>
    %cst_25 = arith.constant dense<0.000000e+00> : vector<8xf32>
    %30 = vector.multi_reduction <add>, %29, %cst_25 [1] : vector<8x384xf32> to vector<8xf32>
    %31 = vector.shape_cast %30 : vector<8xf32> to vector<8x1xf32>
    %32 = arith.addf %1, %31 : vector<8x1xf32>
    %c0_26 = arith.constant 0 : index
    %c0_27 = arith.constant 0 : index
    %33 = vector.load %arg13[%c0_26, %c0_27] : memref<8x384xf32, #tpu.memory_space<vmem>>, vector<8x384xf32>
    tpu.vector_store %arg13[%c0_26, %c0_27], %22 {strides = array<i32>} : memref<8x384xf32, #tpu.memory_space<vmem>>, vector<8x384xf32>,
    %c0_28 = arith.constant 0 : index
    %c0_29 = arith.constant 0 : index
    %34 = vector.load %arg4[%c0_28, %c0_29] : memref<8x1xf32, #tpu.memory_space<vmem>>, vector<8x1xf32>
    %cst_30 = arith.constant 2.560000e+02 : f32
    %35 = vector.broadcast %cst_30 : f32 to vector<8x1xf32>
    %36 = arith.mulf %34, %35 : vector<8x1xf32>
    %37 = arith.addf %28, %36 : vector<8x1xf32>
    %cst_31 = arith.constant 2.000000e+00 : f32
    %38 = vector.broadcast %cst_31 : f32 to vector<8x1xf32>
    %39 = arith.mulf %38, %34 : vector<8x1xf32>
    %40 = arith.mulf %39, %28 : vector<8x1xf32>
    %41 = arith.addf %32, %40 : vector<8x1xf32>
    %42 = arith.mulf %34, %34 : vector<8x1xf32>
    %cst_32 = arith.constant 2.560000e+02 : f32
    %43 = vector.broadcast %cst_32 : f32 to vector<8x1xf32>
    %44 = arith.mulf %42, %43 : vector<8x1xf32>
    %45 = arith.addf %41, %44 : vector<8x1xf32>
    %c0_33 = arith.constant 0 : index
    %c0_34 = arith.constant 0 : index
    %46 = vector.load %arg8[%c0_33, %c0_34] : memref<4x8xf32, #tpu.memory_space<vmem>>, vector<4x8xf32>
    %cst_35 = arith.constant dense<0.000000e+00> : vector<4x1xf32>
    %47 = tpu.matmul %46, %37, %cst_35 {dimension_numbers = #tpu.dot_dimension_numbers<[1], [0], [0], [1], [0, 0, 1, 1], [], []>} : vector<4x8xf32>, vector<8x1xf32>, vector<4x1xf32> -> vector<4x1xf32>
    %c0_36 = arith.constant 0 : index
    %c0_37 = arith.constant 0 : index
    %48 = vector.load %arg8[%c0_36, %c0_37] : memref<4x8xf32, #tpu.memory_space<vmem>>, vector<4x8xf32>
    %cst_38 = arith.constant dense<0.000000e+00> : vector<4x1xf32>
    %49 = tpu.matmul %48, %45, %cst_38 {dimension_numbers = #tpu.dot_dimension_numbers<[1], [0], [0], [1], [0, 0, 1, 1], [], []>} : vector<4x8xf32>, vector<8x1xf32>, vector<4x1xf32> -> vector<4x1xf32>
    %c0_39 = arith.constant 0 : index
    %c0_40 = arith.constant 0 : index
    %50 = vector.load %arg9[%c0_39, %c0_40] : memref<8x4xf32, #tpu.memory_space<vmem>>, vector<8x4xf32>
    %cst_41 = arith.constant dense<0.000000e+00> : vector<8x1xf32>
    %51 = tpu.matmul %50, %47, %cst_41 {dimension_numbers = #tpu.dot_dimension_numbers<[1], [0], [0], [1], [0, 0, 1, 1], [], []>} : vector<8x4xf32>, vector<4x1xf32>, vector<8x1xf32> -> vector<8x1xf32>
    %cst_42 = arith.constant 0.001953125 : f32
    %52 = vector.broadcast %cst_42 : f32 to vector<8x1xf32>
    %53 = arith.mulf %51, %52 : vector<8x1xf32>
    %c0_43 = arith.constant 0 : index
    %c0_44 = arith.constant 0 : index
    %54 = vector.load %arg9[%c0_43, %c0_44] : memref<8x4xf32, #tpu.memory_space<vmem>>, vector<8x4xf32>
    %cst_45 = arith.constant dense<0.000000e+00> : vector<8x1xf32>
    %55 = tpu.matmul %54, %49, %cst_45 {dimension_numbers = #tpu.dot_dimension_numbers<[1], [0], [0], [1], [0, 0, 1, 1], [], []>} : vector<8x4xf32>, vector<4x1xf32>, vector<8x1xf32> -> vector<8x1xf32>
    %cst_46 = arith.constant 0.001953125 : f32
    %56 = vector.broadcast %cst_46 : f32 to vector<8x1xf32>
    %57 = arith.mulf %55, %56 : vector<8x1xf32>
    %58 = arith.mulf %53, %53 : vector<8x1xf32>
    %59 = arith.subf %57, %58 : vector<8x1xf32>
    %cst_47 = arith.constant 0.000000e+00 : f32
    %60 = vector.broadcast %cst_47 : f32 to vector<8x1xf32>
    %61 = arith.maximumf %59, %60 : vector<8x1xf32>
    %cst_48 = arith.constant 9.99999974E-6 : f32
    %62 = vector.broadcast %cst_48 : f32 to vector<8x1xf32>
    %63 = arith.addf %61, %62 : vector<8x1xf32>
    %64 = math.rsqrt %63 : vector<8x1xf32>
    %c0_49 = arith.constant 0 : index
    %c0_50 = arith.constant 0 : index
    %65 = vector.load %arg5[%c0_49, %c0_50] : memref<8x1xf32, #tpu.memory_space<vmem>>, vector<8x1xf32>
    %66 = arith.mulf %65, %64 : vector<8x1xf32>
    %67 = arith.subf %34, %53 : vector<8x1xf32>
    %68 = arith.mulf %67, %66 : vector<8x1xf32>
    %c0_51 = arith.constant 0 : index
    %c0_52 = arith.constant 0 : index
    %69 = vector.load %arg6[%c0_51, %c0_52] : memref<8x1xf32, #tpu.memory_space<vmem>>, vector<8x1xf32>
    %70 = arith.addf %68, %69 : vector<8x1xf32>
    %c0_53 = arith.constant 0 : index
    %c0_54 = arith.constant 0 : index
    %c0_55 = arith.constant 0 : index
    %71 = vector.load %arg10[%c0_53, %c0_54, %c0_55] : memref<1x8x1xf32, #tpu.memory_space<vmem>>, vector<1x8x1xf32>
    %72 = vector.shape_cast %71 : vector<1x8x1xf32> to vector<8x1xf32>
    %cst_56 = arith.constant 1.000000e+00 : f32
    %73 = vector.broadcast %cst_56 : f32 to vector<8x1xf32>
    %74 = arith.addf %72, %73 : vector<8x1xf32>
    %75 = arith.mulf %66, %74 : vector<8x1xf32>
    %76 = arith.mulf %70, %74 : vector<8x1xf32>
    %c0_57 = arith.constant 0 : index
    %c0_58 = arith.constant 0 : index
    %c0_59 = arith.constant 0 : index
    %77 = vector.load %arg11[%c0_57, %c0_58, %c0_59] : memref<1x8x1xf32, #tpu.memory_space<vmem>>, vector<1x8x1xf32>
    %78 = vector.shape_cast %77 : vector<1x8x1xf32> to vector<8x1xf32>
    %79 = arith.addf %76, %78 : vector<8x1xf32>
    %c0_60 = arith.constant 0 : index
    %c0_61 = arith.constant 0 : index
    %80 = vector.load %arg13[%c0_60, %c0_61] : memref<8x384xf32, #tpu.memory_space<vmem>>, vector<8x384xf32>
    %81 = vector.broadcast %75 : vector<8x1xf32> to vector<8x384xf32>
    %82 = arith.mulf %80, %81 : vector<8x384xf32>
    %83 = vector.broadcast %79 : vector<8x1xf32> to vector<8x384xf32>
    %84 = arith.addf %82, %83 : vector<8x384xf32>
    %85 = arith.negf %84 : vector<8x384xf32>
    %86 = math.exp %85 : vector<8x384xf32>
    %cst_62 = arith.constant 1.000000e+00 : f32
    %87 = vector.broadcast %cst_62 : f32 to vector<8x384xf32>
    %88 = arith.addf %87, %86 : vector<8x384xf32>
    %89 = arith.divf %87, %88 : vector<8x384xf32>
    %90 = arith.mulf %84, %89 : vector<8x384xf32>
    %91 = arith.truncf %90 : vector<8x384xf32> to vector<8x384xbf16>
    %c0_63 = arith.constant 0 : index
    %c0_64 = arith.constant 0 : index
    %c0_65 = arith.constant 0 : index
    %92 = vector.load %arg12[%c0_63, %c0_64, %c0_65] : memref<1x8x384xbf16, #tpu.memory_space<vmem>>, vector<1x8x384xbf16>
    %93 = vector.shape_cast %92 : vector<1x8x384xbf16> to vector<8x384xbf16>
    %94 = vector.shape_cast %91 : vector<8x384xbf16> to vector<1x8x384xbf16>
    tpu.vector_store %arg12[%c0_63, %c0_64, %c0_65], %94 {strides = array<i32>} : memref<1x8x384xbf16, #tpu.memory_space<vmem>>, vector<1x8x384xbf16>,
    return
  }
  func.func @transform_0(%arg0: i32, %arg1: i32) -> (i32, i32, i32) {
    %c0_i32 = arith.constant 0 : i32
    %c0_i32_0 = arith.constant 0 : i32
    %c0_i32_1 = arith.constant 0 : i32
    return %arg0, %c0_i32, %c0_i32_0 : i32, i32, i32
  }
  func.func @transform_1(%arg0: i32, %arg1: i32) -> (i32, i32) {
    %c0_i32 = arith.constant 0 : i32
    %c0_i32_0 = arith.constant 0 : i32
    return %arg1, %c0_i32 : i32, i32
  }
  func.func @transform_2(%arg0: i32, %arg1: i32) -> (i32, i32) {
    %c0_i32 = arith.constant 0 : i32
    %c0_i32_0 = arith.constant 0 : i32
    return %arg1, %c0_i32 : i32, i32
  }
  func.func @transform_3(%arg0: i32, %arg1: i32) -> (i32, i32) {
    %c0_i32 = arith.constant 0 : i32
    %c0_i32_0 = arith.constant 0 : i32
    return %arg1, %c0_i32 : i32, i32
  }
  func.func @transform_4(%arg0: i32, %arg1: i32) -> (i32, i32) {
    %c0_i32 = arith.constant 0 : i32
    %c0_i32_0 = arith.constant 0 : i32
    return %arg1, %c0_i32 : i32, i32
  }
  func.func @transform_5(%arg0: i32, %arg1: i32) -> (i32, i32) {
    %c0_i32 = arith.constant 0 : i32
    %c0_i32_0 = arith.constant 0 : i32
    %c0_i32_1 = arith.constant 0 : i32
    return %c0_i32, %c0_i32_0 : i32, i32
  }
  func.func @transform_6(%arg0: i32, %arg1: i32) -> (i32, i32) {
    %c0_i32 = arith.constant 0 : i32
    %c0_i32_0 = arith.constant 0 : i32
    %c0_i32_1 = arith.constant 0 : i32
    return %c0_i32, %c0_i32_0 : i32, i32
  }
  func.func @transform_7(%arg0: i32, %arg1: i32) -> (i32, i32) {
    %c0_i32 = arith.constant 0 : i32
    %c0_i32_0 = arith.constant 0 : i32
    %c0_i32_1 = arith.constant 0 : i32
    return %c0_i32, %c0_i32_0 : i32, i32
  }
  func.func @transform_8(%arg0: i32, %arg1: i32) -> (i32, i32, i32) {
    %c0_i32 = arith.constant 0 : i32
    %c0_i32_0 = arith.constant 0 : i32
    return %arg0, %arg1, %c0_i32 : i32, i32, i32
  }
  func.func @transform_9(%arg0: i32, %arg1: i32) -> (i32, i32, i32) {
    %c0_i32 = arith.constant 0 : i32
    %c0_i32_0 = arith.constant 0 : i32
    return %arg0, %arg1, %c0_i32 : i32, i32, i32
  }
  func.func @transform_10(%arg0: i32, %arg1: i32) -> (i32, i32, i32) {
    %c0_i32 = arith.constant 0 : i32
    %c0_i32_0 = arith.constant 0 : i32
    return %arg0, %arg1, %c0_i32 : i32, i32, i32
  }
}

</mosaic_0001>

<bundles_post_ra>
// kernel: tpu_custom_call.1
= control target key start
LH: loop header
LB: loop body
LE: loop exit
PB: predicated region body
PF: predicated region fallthrough
CT: control target
= control target key end

     0   :  { %6 = vsyncpa [#allocation3], 0  ;;  %s128_s0 = inlined_call_operand.hbm [shape: f32[8,128], index: 0, kind: input, shape index: {}]   ;;  %s129_s1 = inlined_call_operand.hbm [shape: f32[8,128], index: 1, kind: output, shape index: {}]  }
   0x1   :  { %7 = vsyncpa [#allocation4], 0  ;;  %s91_s6 = smov [#allocation2]   ;;  %s43_s10 = scalar_lea.hbm %s128_s0, 128 }
   0x2   :  { %s14_s7 = sshll.u32 %s91_s6, 4  ;;  %p44_p0 = scmp.ne.s32.totalorder %s128_s0, %s43_s10  ;;  %s15_s7 = int_to_ptr.vmem [resolvable:$true] %s14_s7 }
   0x3   :  { %p47_p1 = scmp.lt.u32.totalorder %s43_s10, %s128_s0 }
   0x5   :  { %p49_p2 = pnand %p47_p1, %p44_p0 }
   0x7   :  { %52 = shalt.err (!%p49_p2)
}
   0x8   :  { %s53_s15 = scalar_lea.vmem %s15_s7, 128  ;;  %p58_p4 = scmp.lt.s32.totalorder %s15_s7, %s15_s7 }
   0x9   :  { %p54_p3 = scmp.ne.s32.totalorder %s15_s7, %s53_s15  ;;  %p59_p5 = scmp.lt.s32.totalorder %s53_s15, %s53_s15 }
   0xb   :  { %p60_p6 = por %p59_p5, %p58_p4 }
   0xd   :  { %p61_p7 = pnand %p60_p6, %p54_p3 }
   0xf   :  { %64 = shalt.err (!%p61_p7)
}
  0x10   :  { %17 = dma.hbm_to_vmem [thread:$0]  %s128_s0, 128, %s15_s7, [#allocation3]  }
  0x11   :  { %87 = dma.done.wait [#allocation3], 128  }
  0x12   :  { %88 = vsyncadd [#allocation3], 4294967168  ;;  %v21_v0 = vld [vmem:[#allocation2] sm:$0xff]  ;;  %s92_s18 = smov 127   ;;  %s93_s19 = smov [#allocation5]  }
  0x13   :  { %22 = vrot.lane.b32.xlu0 %v21_v0, %s92_s18  ;;  %s31_s20 = sshll.u32 %s93_s19, 4  ;;  %s32_s20 = int_to_ptr.vmem [resolvable:$true] %s31_s20 }
  0x14   :  { %s65_s21 = scalar_lea.vmem %s32_s20, 128  ;;  %p70_p9 = scmp.lt.s32.totalorder %s32_s20, %s32_s20 }
  0x15   :  { %p66_p8 = scmp.ne.s32.totalorder %s32_s20, %s65_s21  ;;  %p71_p10 = scmp.lt.s32.totalorder %s65_s21, %s65_s21 }
  0x17   :  { %p72_p11 = por %p71_p10, %p70_p9 }
  0x19   :  { %p73_p12 = pnand %p72_p11, %p66_p8 }
  0x85   :  { %v23_v1 = vpop.permute.xlu0 %22 }
  0x86   :  { %24 = vst [vmem:[#allocation5] sm:$0xff] %v23_v1 }
  0x87   :  { %76 = shalt.err (!%p73_p12)
}
  0x88   :  { %s77_s0 = scalar_lea.hbm %s129_s1, 128 }
  0x89   :  { %p78_p13 = scmp.ne.s32.totalorder %s129_s1, %s77_s0  ;;  %p81_p0 = scmp.lt.u32.totalorder %s77_s0, %s129_s1 }
  0x8b   :  { %p83_p1 = pnand %p81_p0, %p78_p13 }
  0x8d   :  { %86 = shalt.err (!%p83_p1)
}
  0x8e   :  { %34 = dma.vmem_to_hbm [thread:$0]  %s32_s20, 128, %s129_s1, [#allocation4]  }
  0x8f   :  { %89 = dma.done.wait [#allocation4], 128  }
  0x90   :  { %90 = vsyncadd [#allocation4], 4294967168 }
  0x91   :  { %38 = vsyncpa [#allocation3], 1 }
  0x92   :  { %39 = vsyncpa [#allocation4], 1 }

// kernel: tpu_custom_call.1
= control target key start
LH: loop header
LB: loop body
LE: loop exit
PB: predicated region body
PF: predicated region fallthrough
CT: control target
= control target key end

     0   :  { %s2646_s0 = inlined_call_operand.hbm [shape: bf16[2,16,432], index: 0, kind: input, shape index: {}]   ;;  %s2647_s1 = inlined_call_operand.hbm [shape: bf16[8,144], index: 1, kind: input, shape index: {}]   ;;  %s2648_s2 = inlined_call_operand.hbm [shape: f32[8,1], index: 2, kind: input, shape index: {}]   ;;  %s2649_s3 = inlined_call_operand.hbm [shape: f32[8,1], index: 3, kind: input, shape index: {}]   ;;  %s2650_s4 = inlined_call_operand.hbm [shape: f32[8,1], index: 4, kind: input, shape index: {}]   ;;  %s2651_s5 = inlined_call_operand.hbm [shape: f32[1,384], index: 5, kind: input, shape index: {}]   ;;  %s2652_s6 = inlined_call_operand.hbm [shape: f32[4,8], index: 6, kind: input, shape index: {}]   ;;  %s2653_s7 = inlined_call_operand.hbm [shape: f32[8,4], index: 7, kind: input, shape index: {}]   ;;  %s2654_s8 = inlined_call_operand.hbm [shape: f32[2,8,1], index: 8, kind: input, shape index: {}]   ;;  %s2655_s9 = inlined_call_operand.hbm [shape: f32[2,8,1], index: 9, kind: input, shape index: {}]   ;;  %s2656_s10 = inlined_call_operand.hbm [shape: bf16[2,8,384], index: 10, kind: output, shape index: {}]  }
   0x1   :  { %2683 = sst [smem:[#allocation36_spill]] %s2646_s0 }
   0x2   :  { %2684 = sst [smem:[#allocation37_spill]] %s2656_s10 }
   0x3   :  { %15 = vsyncpa [#allocation4], 0 }
   0x4   :  { %17 = vsyncpa [#allocation4 + $0x1], 0 }
   0x5   :  { %18 = vsyncpa [#allocation7], 0 }
   0x6   :  { %19 = vsyncpa [#allocation10], 0 }
   0x7   :  { %20 = vsyncpa [#allocation13], 0 }
   0x8   :  { %21 = vsyncpa [#allocation16], 0 }
   0x9   :  { %22 = vsyncpa [#allocation5], 0 }
   0xa   :  { %24 = vsyncpa [#allocation5 + $0x1], 0  ;;  %s2192_s13 = smov 0   ;;  %s2194_s14 = smov 0  }
   0xb   :  { %s2196_s15 = smov 0   ;;  %s2198_s16 = smov 0  }
   0xc   :  { %s2200_s17 = smov 0   ;;  %s2202_s18 = smov 0  }
   0xd LB: > { %2685 = sst [smem:[#allocation27_spill]] %s2091_s13  ;;  %s2223_s19 = sadd.s32 4294967295, %s2111_s18   ;;  %s2111_s18 = sphi %s2202_s18, %s30_s18   ;;  %s2107_s17 = sphi %s2200_s17, %s2742_s17   ;;  %s2103_s16 = sphi %s2198_s16, %s2741_s16   ;;  %s2099_s15 = sphi %s2196_s15, %s2740_s15   ;;  %s2095_s14 = sphi %s2194_s14, %s2739_s14   ;;  %s2091_s13 = sphi %s2192_s13, %s2736_s13  }
   0xe   : > { %2686 = sst [smem:[#allocation28_spill]] %s2095_s14  ;;  %s1458_s20 = sadd.s32 4294967294, %s2111_s18  }
   0xf   : > { %2687 = sst [smem:[#allocation29_spill]] %s2103_s16  ;;  %s42_s21 = sadd.s32 1, %s2107_s17 }
  0x10   : > { %2688 = sst [smem:[#allocation30_spill]] %s2111_s18  ;;  %s49_s22 = sadd.s32 1, %s2099_s15 }
  0x11   : > { %p44_p0 = scmp.ge.s32.totalorder %s42_s21, 2  ;;  %p56_p1 = scmp.ne.s32.totalorder %s2099_s15, %s2095_s14 }
  0x12   : > { %p57_p2 = scmp.eq.s32.totalorder %s2111_s18, 0  ;;  %p62_p3 = scmp.ne.s32.totalorder %s2095_s14, %s2091_s13 }
  0x13   : > { %s2744_s21 = smov (%p44_p0, %s42_s21), 0  ;;  %p2657_p5 = scmp.eq.s32.totalorder %s2223_s19, 0 }
  0x14   : > { %2689 = sst [smem:[#allocation31_spill]] %s2744_s21  ;;  %p2235_p4 = por %p57_p2, %p56_p1 }
  0x15   : > { %s46_s24 = ssub.s32 %s2107_s17, %s2744_s21  ;;  %p311_p6 = scmp.eq.s32.totalorder %s2223_s19, 1 }
  0x16   : > { %p47_p7 = scmp.eq.s32.totalorder %s46_s24, 0  ;;  %p2245_p8 = por %p2657_p5, %p62_p3 }
  0x17   : > { %p2249_p9 = por %p311_p6, %p56_p1  ;;  %p317_p10 = scmp.eq.s32.totalorder %s1458_s20, 1 }
  0x18   : > { %s2691_s25 = scalar_select %p2245_p8, 1, 0 }
  0x19   : > { %s2693_s26 = scalar_select %p2249_p9, 1, 0 }
  0x1a   : > { %2692 = sst [smem:[#allocation32_spill]] %s2691_s25  ;;  %p2256_p11 = por %p317_p10, %p62_p3 }
  0x1b   : > { %2694 = sst [smem:[#allocation33_spill]] %s2693_s26  ;;  %p1459_p12 = scmp.ge.s32.totalorder %s2111_s18, 1 }
  0x1c   : > { %s2254_s27 = scalar_select %p47_p7, %s2099_s15, %s49_s22  }
  0x1d   : > { %s2696_s28 = scalar_select %p2256_p11, 1, 0 }
  0x1e   : > { %2695 = sst [smem:[#allocation34_spill]] %s2254_s27  ;;  %p324_p13 = scmp.lt.s32.totalorder %s2111_s18, 3 }
  0x1f   : > { %2697 = sst [smem:[#allocation35_spill]] %s2696_s28  ;;  %p1621_p2 = scmp.lt.s32.totalorder %s2111_s18, 2 }
  0x20   : > { %p2264_p5 = pnand %p1459_p12, %p324_p13  ;;  %s423_s30 = sand.u32 1, %s2111_s18  }
  0x21   : > { %s2662_s11 = sand.u32 1, %s2099_s15   ;;  %s1509_s20 = sshll.u32 %s2107_s17, 9 }
  0x22   : > { %s2698_s29 = scalar_select %p2264_p5, 1, 0 }
  0x23   : > { %p1578_p1 = pneg %p2264_p5  ;;  %s1468_s12 = sshll.u32 %s2662_s11, 5 }
  0x24   : > { %p2699_p3 = scmp.eq.s32.totalorder %s2223_s19, 0  ;;  %s2701_s0 = sld [smem:[#allocation36_spill]] }
  0x25   : > { %s427_s18 = scalar_lea.vmem [#allocation3], %s1468_s12  ;;  %p2288_p7 = pnand %p1621_p2, %p2235_p4 }
  0x26   : > { %p2277_p6 = pnand %p1578_p1, %p2699_p3  ;;  %s434_s28 = sshll.u32 %s427_s18, 4  ;;  %s2292_s28 = int_to_ptr.vmem [resolvable:$true] %s434_s28 }
  0x27   : > { %s2702_s11 = scalar_select %p2288_p7, 1, 0 }
  0x28   : > { %s2700_s22 = scalar_select %p2277_p6, 1, 0 }
  0x29   : > { %s2294_s13 = scalar_lea.sflag [#allocation4], %s423_s30  ;;  %p2300_p12 = pneg %p2288_p7 }
  0x2a   : > { %s2284_s27 = scalar_lea.hbm %s2701_s0, %s1509_s20  ;;  %s1728_s12 = scalar_lea.hbm %s2701_s0, 1024 }
  0x2b   : > { %s1723_s10 = scalar_lea.hbm %s2284_s27, 512  ;;  %p1729_p4 = scmp.lt.u32.totalorder %s2284_s27, %s2701_s0 }
  0x2c   : > { %p1724_p10 = scmp.ne.s32.totalorder %s2284_s27, %s1723_s10  ;;  %p1730_p2 = scmp.lt.u32.totalorder %s1728_s12, %s1723_s10 }
  0x2d   : > { %s2703_s21 = scalar_select %p2300_p12, 1, 0 }
  0x2e   : > { %p1726_p13 = pnand %p2300_p12, %p1724_p10  ;;  %p1731_p3 = por %p1730_p2, %p1729_p4 }
  0x2f   : > { %p1732_p0 = scmp.lt.u32.totalorder %s1723_s10, %s2284_s27 }
  0x30   : > { %p1727_p1 = pneg %p1726_p13 }
  0x31   : > { %p1733_p11 = por %p1732_p0, %p1731_p3 }
  0x33   : > { %p1734_p9 = pnand %p1733_p11, %p1727_p1 }
  0x35   : > { %1737 = shalt.err (!%p1734_p9)
}
  0x36   : > { %s1738_s30 = scalar_lea.vmem %s2292_s28, 512  ;;  %s2113_s18 = smov [#allocation3]  }
  0x37   : > { %p1739_p10 = scmp.ne.s32.totalorder %s2292_s28, %s1738_s30  ;;  %s1743_s23 = sshll.u32 %s2113_s18, 4  ;;  %s1744_s23 = int_to_ptr.vmem [resolvable:$false] %s1743_s23 }
  0x38   : > { %s1745_s20 = scalar_lea.vmem %s1744_s23, 1024  ;;  %p1746_p5 = scmp.lt.s32.totalorder %s2292_s28, %s1744_s23 }
  0x39   : > { %p1741_p13 = pnand %p1739_p10, %p2300_p12  ;;  %p1747_p6 = scmp.lt.s32.totalorder %s1745_s20, %s1738_s30 }
  0x3b   : > { %p1742_p8 = pneg %p1741_p13  ;;  %p1748_p4 = por %p1747_p6, %p1746_p5 }
  0x3d   : > { %p1749_p2 = pnand %p1748_p4, %p1742_p8 }
  0x3f   : > { %1752 = shalt.err (!%p1749_p2)
}
  0x40   : > { %s2114_s10 = smov 256   ;;  %s2115_s12 = smov 16  }
  0x41   : > { %1603 = dma.hbm_to_vmem [thread:$0]  (!%p2288_p7), %s2284_s27, 512, %s2292_s28, %s2294_s13, %s2114_s10, %s2114_s10, %s2115_s12  }
  0x42   : > { %s2116_s24 = smov [#allocation6]   ;;  %s2117_s18 = smov [#allocation9]  }
  0x43   : > { %s340_s0 = sshll.u32 %s2116_s24, 4  ;;  %s366_s26 = sshll.u32 %s2117_s18, 4  ;;  %s341_s0 = int_to_ptr.vmem [resolvable:$true] %s340_s0  ;;  %s367_s26 = int_to_ptr.vmem [resolvable:$true] %s366_s26 }
  0x44   : > { %s1753_s30 = scalar_lea.hbm %s2647_s1, 128  ;;  %p2704_p8 = scmp.ne.s32.totalorder %s2700_s22, 0 }
  0x45   : > { %p1754_p5 = scmp.ne.s32.totalorder %s2647_s1, %s1753_s30  ;;  %p1760_p6 = scmp.lt.u32.totalorder %s1753_s30, %s2647_s1 }
  0x46   : > { %p2332_p9 = pneg %p2704_p8 }
  0x48   : > { %s2705_s14 = scalar_select %p2332_p9, 1, 0 }
  0x49   : > { %p1756_p11 = pnand %p2332_p9, %p1754_p5 }
  0x4b   : > { %p1757_p0 = pneg %p1756_p11 }
  0x4d   : > { %p1762_p1 = pnand %p1760_p6, %p1757_p0 }
  0x4f   : > { %1765 = shalt.err (!%p1762_p1)
}
  0x50   : > { %s1766_s16 = scalar_lea.vmem %s341_s0, 128  ;;  %p1774_p4 = scmp.lt.s32.totalorder %s341_s0, %s341_s0 }
  0x51   : > { %p1767_p3 = scmp.ne.s32.totalorder %s341_s0, %s1766_s16  ;;  %p1775_p2 = scmp.lt.s32.totalorder %s1766_s16, %s1766_s16 }
  0x53   : > { %p1769_p10 = pnand %p1767_p3, %p2332_p9  ;;  %p1776_p7 = por %p1775_p2, %p1774_p4 }
  0x55   : > { %p1770_p13 = pneg %p1769_p10 }
  0x57   : > { %p1777_p12 = pnand %p1776_p7, %p1770_p13 }
  0x59   : > { %1780 = shalt.err (!%p1777_p12)
}
  0x5a   : > { %1581 = dma.hbm_to_vmem [thread:$0]  (!%p2704_p8), %s2647_s1, 128, %s341_s0, [#allocation7]  }
  0x5b   : > { %s1781_s18 = scalar_lea.hbm %s2649_s3, 128 }
  0x5c   : > { %p1782_p5 = scmp.ne.s32.totalorder %s2649_s3, %s1781_s18  ;;  %p1788_p12 = scmp.lt.u32.totalorder %s1781_s18, %s2649_s3 }
  0x5e   : > { %p1784_p11 = pnand %p1782_p5, %p2332_p9 }
  0x60   : > { %p1785_p7 = pneg %p1784_p11 }
  0x62   : > { %p1790_p0 = pnand %p1788_p12, %p1785_p7 }
  0x64   : > { %1793 = shalt.err (!%p1790_p0)
}
  0x65   : > { %s1794_s28 = scalar_lea.vmem %s367_s26, 128  ;;  %p1802_p10 = scmp.lt.s32.totalorder %s367_s26, %s367_s26 }
  0x66   : > { %p1795_p6 = scmp.ne.s32.totalorder %s367_s26, %s1794_s28  ;;  %p1803_p13 = scmp.lt.s32.totalorder %s1794_s28, %s1794_s28 }
  0x68   : > { %p1797_p1 = pnand %p1795_p6, %p2332_p9  ;;  %p1804_p4 = por %p1803_p13, %p1802_p10 }
  0x6a   : > { %p1798_p3 = pneg %p1797_p1 }
  0x6c   : > { %p1805_p2 = pnand %p1804_p4, %p1798_p3 }
  0x6e   : > { %1808 = shalt.err (!%p1805_p2)
}
  0x6f   : > { %1587 = dma.hbm_to_vmem [thread:$0]  (!%p2704_p8), %s2649_s3, 128, %s367_s26, [#allocation10]  }
  0x70   : > { %s2118_s25 = smov [#allocation12]   ;;  %s2706_s12 = sand.u32 1, %s2099_s15  }
  0x71   : > { %s390_s10 = sshll.u32 %s2118_s25, 4  ;;  %s2368_s24 = sshll.u32 %s2706_s12, 3  ;;  %s391_s10 = int_to_ptr.vmem [resolvable:$true] %s390_s10 }
  0x72   : > { %s1809_s30 = scalar_lea.hbm %s2651_s5, 48 }
  0x73   : > { %p1810_p5 = scmp.ne.s32.totalorder %s2651_s5, %s1809_s30  ;;  %p1816_p12 = scmp.lt.u32.totalorder %s1809_s30, %s2651_s5 }
  0x75   : > { %p1812_p11 = pnand %p1810_p5, %p2332_p9 }
  0x77   : > { %p1813_p7 = pneg %p1812_p11 }
  0x79   : > { %p1818_p0 = pnand %p1816_p12, %p1813_p7 }
  0x7b   : > { %1821 = shalt.err (!%p1818_p0)
}
  0x7c   : > { %s1822_s26 = scalar_lea.vmem %s391_s10, 48  ;;  %s1829_s16 = scalar_lea.vmem %s391_s10, 64 }
  0x7d   : > { %p1823_p6 = scmp.ne.s32.totalorder %s391_s10, %s1822_s26  ;;  %p1830_p10 = scmp.lt.s32.totalorder %s391_s10, %s391_s10 }
  0x7e   : > { %p1831_p13 = scmp.lt.s32.totalorder %s1829_s16, %s1822_s26 }
  0x7f   : > { %p1825_p1 = pnand %p1823_p6, %p2332_p9 }
  0x80   : > { %p1832_p4 = por %p1831_p13, %p1830_p10 }
  0x81   : > { %p1826_p3 = pneg %p1825_p1 }
  0x83   : > { %p1833_p2 = pnand %p1832_p4, %p1826_p3 }
  0x85   : > { %1836 = shalt.err (!%p1833_p2)
}
  0x86   : > { %1593 = dma.hbm_to_vmem [thread:$0]  (!%p2704_p8), %s2651_s5, 48, %s391_s10, [#allocation13]  }
  0x87   : > { %s2681_s18 = sshll.u32 %s2107_s17, 7  ;;  %s448_s23 = scalar_lea.vmem [#allocation17], %s2368_s24 }
  0x88   : > { %s456_s30 = sshll.u32 %s448_s23, 4  ;;  %s454_s28 = scalar_lea.hbm %s2654_s8, %s2681_s18  ;;  %s457_s30 = int_to_ptr.vmem [resolvable:$true] %s456_s30 }
  0x89   : > { %s1837_s0 = scalar_lea.hbm %s454_s28, 128  ;;  %p2707_p11 = scmp.ne.s32.totalorder %s2703_s21, 0 }
  0x8a   : > { %p1838_p5 = scmp.ne.s32.totalorder %s454_s28, %s1837_s0  ;;  %s1842_s25 = scalar_lea.hbm %s2654_s8, 256 }
  0x8b   : > { %p1843_p0 = scmp.lt.u32.totalorder %s454_s28, %s2654_s8  ;;  %p1844_p6 = scmp.lt.u32.totalorder %s1842_s25, %s1837_s0 }
  0x8c   : > { %p1840_p7 = pnand %p1838_p5, %p2707_p11  ;;  %p1846_p3 = scmp.lt.u32.totalorder %s1837_s0, %s454_s28 }
  0x8d   : > { %p1845_p1 = por %p1844_p6, %p1843_p0 }
  0x8e   : > { %p1841_p12 = pneg %p1840_p7 }
  0x8f   : > { %p1847_p10 = por %p1846_p3, %p1845_p1 }
  0x91   : > { %p1848_p13 = pnand %p1847_p10, %p1841_p12 }
  0x93   : > { %1851 = shalt.err (!%p1848_p13)
}
  0x94   : > { %s1852_s23 = scalar_lea.vmem %s457_s30, 128  ;;  %s2119_s20 = smov [#allocation17]  }
  0x95   : > { %p1853_p4 = scmp.ne.s32.totalorder %s457_s30, %s1852_s23  ;;  %s1857_s27 = sshll.u32 %s2119_s20, 4  ;;  %s1858_s27 = int_to_ptr.vmem [resolvable:$false] %s1857_s27 }
  0x96   : > { %s1859_s26 = scalar_lea.vmem %s1858_s27, 256  ;;  %p1860_p7 = scmp.lt.s32.totalorder %s457_s30, %s1858_s27 }
  0x97   : > { %p1855_p2 = pnand %p1853_p4, %p2707_p11  ;;  %p1861_p8 = scmp.lt.s32.totalorder %s1859_s26, %s1852_s23 }
  0x99   : > { %p1856_p5 = pneg %p1855_p2  ;;  %p1862_p9 = por %p1861_p8, %p1860_p7 }
  0x9b   : > { %p1863_p0 = pnand %p1862_p9, %p1856_p5 }
  0x9d   : > { %1866 = shalt.err (!%p1863_p0)
}
  0x9e   : > { %p2708_p6 = scmp.ne.s32.totalorder %s2702_s11, 0  ;;  %s2120_s0 = smov [#allocation8]  }
  0x9f   : > { %s353_s16 = sshll.u32 %s2120_s0, 4  ;;  %s2121_s25 = smov [#allocation11]   ;;  %s354_s16 = int_to_ptr.vmem [resolvable:$true] %s353_s16 }
  0xa0   : > { %1606 = dma.hbm_to_vmem [thread:$0]  (!%p2708_p6), %s454_s28, 128, %s457_s30, %s2294_s13  }
  0xa1   : > { %s379_s12 = sshll.u32 %s2121_s25, 4  ;;  %s1867_s27 = scalar_lea.hbm %s2648_s2, 128  ;;  %s2408_s12 = int_to_ptr.vmem [resolvable:$true] %s379_s12 }
  0xa2   : > { %p1868_p8 = scmp.ne.s32.totalorder %s2648_s2, %s1867_s27  ;;  %p2709_p9 = scmp.ne.s32.totalorder %s2705_s14, 0 }
  0xa3   : > { %p1874_p3 = scmp.lt.u32.totalorder %s1867_s27, %s2648_s2 }
  0xa4   : > { %p1870_p12 = pnand %p1868_p8, %p2709_p9 }
  0xa6   : > { %p1871_p1 = pneg %p1870_p12 }
  0xa8   : > { %p1876_p10 = pnand %p1874_p3, %p1871_p1 }
  0xaa   : > { %1879 = shalt.err (!%p1876_p10)
}
  0xab   : > { %s1880_s28 = scalar_lea.vmem %s354_s16, 128  ;;  %p1888_p5 = scmp.lt.s32.totalorder %s354_s16, %s354_s16 }
  0xac   : > { %p1881_p13 = scmp.ne.s32.totalorder %s354_s16, %s1880_s28  ;;  %p1889_p7 = scmp.lt.s32.totalorder %s1880_s28, %s1880_s28 }
  0xae   : > { %p1883_p4 = pnand %p1881_p13, %p2709_p9  ;;  %p1890_p0 = por %p1889_p7, %p1888_p5 }
  0xb0   : > { %p1884_p2 = pneg %p1883_p4 }
  0xb2   : > { %p1891_p6 = pnand %p1890_p0, %p1884_p2 }
  0xb4   : > { %1894 = shalt.err (!%p1891_p6)
}
  0xb5   : > { %p2710_p8 = scmp.ne.s32.totalorder %s2700_s22, 0  ;;  %s1895_s20 = scalar_lea.hbm %s2650_s4, 128 }
  0xb6   : > { %p1896_p12 = scmp.ne.s32.totalorder %s2650_s4, %s1895_s20  ;;  %p1902_p6 = scmp.lt.u32.totalorder %s1895_s20, %s2650_s4 }
  0xb7   : > { %1584 = dma.hbm_to_vmem [thread:$0]  (!%p2710_p8), %s2648_s2, 128, %s354_s16, [#allocation7]  }
  0xb8   : > { %p1898_p1 = pnand %p1896_p12, %p2709_p9 }
  0xba   : > { %p1899_p3 = pneg %p1898_p1 }
  0xbc   : > { %p1904_p10 = pnand %p1902_p6, %p1899_p3 }
  0xbe   : > { %1907 = shalt.err (!%p1904_p10)
}
  0xbf   : > { %s1908_s16 = scalar_lea.vmem %s2408_s12, 128  ;;  %p1916_p5 = scmp.lt.s32.totalorder %s2408_s12, %s2408_s12 }
  0xc0   : > { %p1909_p13 = scmp.ne.s32.totalorder %s2408_s12, %s1908_s16  ;;  %p1917_p7 = scmp.lt.s32.totalorder %s1908_s16, %s1908_s16 }
  0xc2   : > { %p1911_p4 = pnand %p1909_p13, %p2709_p9  ;;  %p1918_p0 = por %p1917_p7, %p1916_p5 }
  0xc4   : > { %p1912_p2 = pneg %p1911_p4 }
  0xc6   : > { %p1919_p12 = pnand %p1918_p0, %p1912_p2 }
  0xc8   : > { %1922 = shalt.err (!%p1919_p12)
}
  0xc9   : > { %1590 = dma.hbm_to_vmem [thread:$0]  (!%p2710_p8), %s2650_s4, 128, %s2408_s12, [#allocation10]  }
  0xca   : > { %s2122_s25 = smov [#allocation14]   ;;  %s2123_s10 = smov [#allocation15]  }
  0xcb   : > { %s401_s18 = sshll.u32 %s2122_s25, 4  ;;  %s412_s20 = sshll.u32 %s2123_s10, 4  ;;  %s402_s18 = int_to_ptr.vmem [resolvable:$true] %s401_s18  ;;  %s2451_s20 = int_to_ptr.vmem [resolvable:$true] %s412_s20 }
  0xcc   : > { %s1923_s26 = scalar_lea.hbm %s2652_s6, 64 }
  0xcd   : > { %p1924_p1 = scmp.ne.s32.totalorder %s2652_s6, %s1923_s26  ;;  %p1930_p10 = scmp.lt.u32.totalorder %s1923_s26, %s2652_s6 }
  0xcf   : > { %p1926_p3 = pnand %p1924_p1, %p2709_p9 }
  0xd1   : > { %p1927_p6 = pneg %p1926_p3 }
  0xd3   : > { %p1932_p13 = pnand %p1930_p10, %p1927_p6 }
  0xd5   : > { %1935 = shalt.err (!%p1932_p13)
}
  0xd6   : > { %s1936_s0 = scalar_lea.vmem %s402_s18, 64  ;;  %p1944_p7 = scmp.lt.s32.totalorder %s402_s18, %s402_s18 }
  0xd7   : > { %p1937_p4 = scmp.ne.s32.totalorder %s402_s18, %s1936_s0  ;;  %p1945_p0 = scmp.lt.s32.totalorder %s1936_s0, %s1936_s0 }
  0xd9   : > { %p1939_p2 = pnand %p1937_p4, %p2709_p9  ;;  %p1946_p12 = por %p1945_p0, %p1944_p7 }
  0xdb   : > { %p1940_p5 = pneg %p1939_p2 }
  0xdd   : > { %p1947_p11 = pnand %p1946_p12, %p1940_p5 }
  0xdf   : > { %1950 = shalt.err (!%p1947_p11)
}
  0xe0   : > { %1596 = dma.hbm_to_vmem [thread:$0]  (!%p2710_p8), %s2652_s6, 64, %s402_s18, [#allocation13]  }
  0xe1   : > { %s1951_s26 = scalar_lea.hbm %s2653_s7, 128 }
  0xe2   : > { %p1952_p1 = scmp.ne.s32.totalorder %s2653_s7, %s1951_s26  ;;  %p1958_p11 = scmp.lt.u32.totalorder %s1951_s26, %s2653_s7 }
  0xe4   : > { %p1954_p3 = pnand %p1952_p1, %p2709_p9 }
  0xe6   : > { %p1955_p6 = pneg %p1954_p3 }
  0xe8   : > { %p1960_p10 = pnand %p1958_p11, %p1955_p6 }
  0xea   : > { %1963 = shalt.err (!%p1960_p10)
}
  0xeb   : > { %s1964_s18 = scalar_lea.vmem %s2451_s20, 128  ;;  %p1972_p5 = scmp.lt.s32.totalorder %s2451_s20, %s2451_s20 }
  0xec   : > { %p1965_p13 = scmp.ne.s32.totalorder %s2451_s20, %s1964_s18  ;;  %p1973_p7 = scmp.lt.s32.totalorder %s1964_s18, %s1964_s18 }
  0xee   : > { %p1967_p4 = pnand %p1965_p13, %p2709_p9  ;;  %p1974_p0 = por %p1973_p7, %p1972_p5 }
  0xf0   : > { %p1968_p2 = pneg %p1967_p4 }
  0xf2   : > { %p1975_p12 = pnand %p1974_p0, %p1968_p2 }
  0xf4   : > { %1978 = shalt.err (!%p1975_p12)
}
  0xf5   : > { %1599 = dma.hbm_to_vmem [thread:$0]  (!%p2710_p8), %s2653_s7, 128, %s2451_s20, [#allocation16]  }
  0xf6   : > { %s2711_s10 = sshll.u32 %s2107_s17, 7  ;;  %s467_s26 = scalar_lea.vmem [#allocation18], %s2368_s24 }
  0xf7   : > { %s2499_s23 = scalar_lea.hbm %s2655_s9, %s2711_s10  ;;  %s475_s22 = sshll.u32 %s467_s26, 4  ;;  %s476_s22 = int_to_ptr.vmem [resolvable:$true] %s475_s22 }
  0xf8   : > { %s1979_s30 = scalar_lea.hbm %s2499_s23, 128  ;;  %p2712_p1 = scmp.ne.s32.totalorder %s2703_s21, 0 }
  0xf9   : > { %p1980_p9 = scmp.ne.s32.totalorder %s2499_s23, %s1979_s30  ;;  %s1984_s28 = scalar_lea.hbm %s2655_s9, 256 }
  0xfa   : > { %p1985_p8 = scmp.lt.u32.totalorder %s2499_s23, %s2655_s9  ;;  %p1986_p11 = scmp.lt.u32.totalorder %s1984_s28, %s1979_s30 }
  0xfb   : > { %p1982_p3 = pnand %p1980_p9, %p2712_p1  ;;  %p1988_p13 = scmp.lt.u32.totalorder %s1979_s30, %s2499_s23 }
  0xfc   : > { %p1987_p10 = por %p1986_p11, %p1985_p8 }
  0xfd   : > { %p1983_p6 = pneg %p1982_p3 }
  0xfe   : > { %p1989_p4 = por %p1988_p13, %p1987_p10 }
 0x100   : > { %p1990_p2 = pnand %p1989_p4, %p1983_p6 }
 0x102   : > { %1993 = shalt.err (!%p1990_p2)
}
 0x103   : > { %s1994_s24 = scalar_lea.vmem %s476_s22, 128  ;;  %s2124_s0 = smov [#allocation18]  }
 0x104   : > { %p1995_p5 = scmp.ne.s32.totalorder %s476_s22, %s1994_s24  ;;  %s1999_s25 = sshll.u32 %s2124_s0, 4  ;;  %s2000_s25 = int_to_ptr.vmem [resolvable:$false] %s1999_s25 }
 0x105   : > { %s2001_s10 = scalar_lea.vmem %s2000_s25, 256  ;;  %p2002_p12 = scmp.lt.s32.totalorder %s476_s22, %s2000_s25 }
 0x106   : > { %p1997_p7 = pnand %p1995_p5, %p2712_p1  ;;  %p2003_p9 = scmp.lt.s32.totalorder %s2001_s10, %s1994_s24 }
 0x108   : > { %p1998_p0 = pneg %p1997_p7  ;;  %p2004_p3 = por %p2003_p9, %p2002_p12 }
 0x10a   : > { %p2005_p8 = pnand %p2004_p3, %p1998_p0 }
 0x10c   : > { %2008 = shalt.err (!%p2005_p8)
}
 0x10d   : > { %p2713_p11 = scmp.ne.s32.totalorder %s2702_s11, 0  ;;  %p2714_p6 = scmp.ne.s32.totalorder %s2698_s29, 0 }
 0x10e   : > { %s2715_s21 = sld [smem:[#allocation28_spill]] (!%p2714_p6)  ;;  %s2716_s14 = sld [smem:[#allocation32_spill]] (!%p2714_p6) }
 0x10f   : > { %1609 = dma.hbm_to_vmem [thread:$0]  (!%p2713_p11), %s2499_s23, 128, %s476_s22, %s2294_s13  }
 0x110   : > { %484 = sbr.rel (%p2714_p6) target bundleno = 1475 (0x5c3), region = 60  ;;  %s486_s27 = sand.u32 (!%p2714_p6), 1, %s2223_s19  }
 0x111   : > { %s487_s16 = scalar_lea.sflag (!%p2714_p6), [#allocation4], %s486_s27 }
 0x114   : > { %s2524_s26 = sand.u32 (!%p2714_p6), 1, %s2715_s21   ;;  %p2717_p1 = scmp.ne.s32.totalorder (!%p2714_p6), %s2716_s14, 0 }
 0x115   : > { %s1476_s30 = sshll.u32 (!%p2714_p6), %s2524_s26, 5 }
 0x116   : > { %s490_s20 = scalar_lea.vmem (!%p2714_p6), [#allocation3], %s1476_s30 }
 0x117   : > { %2062 = dma.done.wait (%p2717_p1), %s487_s16, 512  }
 0x118   : > { %2064 = vsyncadd (%p2717_p1), %s487_s16, 4294966784  ;;  %p2718_p10 = scmp.eq.s32.totalorder %s2223_s19, 0 }
 0x11a   : > { %2066 = dma.done.wait (%p2718_p10), [#allocation7], 256   ;;  %p2719_p13 = pmov %p2718_p10 }
 0x11b   : > { %p2720_p4 = pmov %p2718_p10 }
 0x11c   : > { %2068 = vsyncadd (%p2719_p13), [#allocation7], 4294967040 }
 0x11d   : > { %2070 = dma.done.wait (%p2720_p4), [#allocation10], 256   ;;  %p2721_p2 = pmov %p2720_p4 }
 0x11f   : > { %2072 = vsyncadd (%p2721_p2), [#allocation10], 4294967040  ;;  %p2722_p5 = pmov %p2721_p2 }
 0x120   : > { %p2723_p7 = pmov %p2721_p2 }
 0x121   : > { %2074 = dma.done.wait (%p2722_p5), [#allocation13], 112  }
 0x122   : > { %2076 = vsyncadd (%p2723_p7), [#allocation13], 4294967184  ;;  %p2724_p0 = pmov %p2721_p2 }
 0x124   : > { %2078 = dma.done.wait (%p2724_p0), [#allocation16], 128   ;;  %p2725_p12 = pmov %p2724_p0 }
 0x125   : > { %s1484_s13 = sshll.u32 %s2524_s26, 3 }
 0x126   : > { %2080 = vsyncadd (%p2725_p12), [#allocation16], 4294967168  ;;  %s2550_s29 = scalar_lea.vmem [#allocation17], %s1484_s13 }
 0x127   : > { %2082 = dma.done.wait (%p2717_p1), %s487_s16, 256  }
 0x128   : > { %2084 = vsyncadd (%p2717_p1), %s487_s16, 4294967040  ;;  %v2125_v0 = vmov 0   ;;  %v1700_v1 = vld [vmem:[%s490_s20 + $0x4] ss:$16 sps:$4 sm:$0xff]   ;;  %v1702_v2 = vld [vmem:[%s490_s20] ss:$16 sps:$4 sm:$0xff]  }
 0x129   : > { %786 = vmatprep.subr.bf16.mxu1 %v2125_v0  ;;  %1698 = vset.pattern.permute.xlu0 %v2125_v0  ;;  %s2126_s19 = smov 127   ;;  %v1703_v3 = vld [vmem:[%s490_s20 + $0x8] ss:$16 sps:$4 sm:$0xff]   ;;  %v1705_v4 = vld [vmem:[%s490_s20 + $0xc] ss:$16 sps:$4 sm:$0xff]   ;;  %s2127_s11 = smov 126  }
 0x12a   : > { %1699 = vset.pattern.permute.xlu1 %v2125_v0  ;;  %616 = vrot.lane.b32.xlu0 %v1700_v1, %s2126_s19  ;;  %v1706_v5 = vld [vmem:[%s490_s20 + $0x8] ss:$16 sps:$4 sm:$0xff]   ;;  %s2128_s23 = smov 110   ;;  %s2129_s22 = smov 109   ;;  %v2560_v6 = vld [vmem:[#allocation6] sm:$0xff]  ;;  %vm741_vm0 = vcmask 130048  }
 0x12b   : > { %745 = vmatprep.subr.bf16.mxu0 %v1700_v1  ;;  %614 = vrot.lane.b32.xlu1 %v1702_v2, %s2126_s19  ;;  %s2130_s28 = smov 108   ;;  %s2131_s12 = smov 92   ;;  %v1492_v7 = vcombine.high %v2560_v6, %v2560_v6  ;;  %vm622_vm1 = vcmask 1039360   ;;  %vm637_vm2 = vcmask 1031168   ;;  %vm652_vm3 = vcmask 900096  }
 0x12c   : > { %746 = vmatpush1.bf16.msra.mxu0 %v1702_v2  ;;  %787 = vmatpush1.bf16.msra.mxu1 %v1706_v5  ;;  %s2132_s18 = smov 91   ;;  %s2133_s24 = smov 90   ;;  %vm667_vm4 = vcmask 891904   ;;  %vm682_vm5 = vcmask 883712   ;;  %vm697_vm6 = vcmask 752640   ;;  %vm712_vm7 = vcmask 744448  }
 0x12d   : > { %788 = vmatprep.subr.bf16.mxu1 %v2125_v0  ;;  %1493 = vmatprep.mubr.msk.bf16.mxu0 %vm741_vm0, %v1492_v7  ;;  %vm727_vm8 = vcmask 736256   ;;  %v1491_v63 = vcombine.low %v2560_v6, %v2560_v6  ;;  %v826_v5 = vld [vmem:[#allocation12] sm:$0x7]  ;;  %vm2135_vm9 = vmmov 0   ;;  %vm872_vm10 = vcmask 64512   ;;  %s536_s0 = scalar_lea.vmem [#allocation18], %s1484_s13 }
 0x12e   : > { %618 = vrot.lane.b32.xlu0 %v1703_v3, %s2126_s19  ;;  %1494 = vmatprep.mubr.msk.bf16.mxu1 %vm741_vm0, %v1492_v7  ;;  %vm1021_vm11 = vcmask 1043456   ;;  %vm1017_vm12 = vcmask 31744   ;;  %s2726_s25 = sld [smem:[#allocation29_spill]]  ;;  %s1540_s10 = smul.u32 12, %s2524_s26 }
 0x12f   : > { %620 = vrot.lane.b32.xlu1 %v1705_v4, %s2126_s19  ;;  %s2727_s21 = sld [smem:[#allocation33_spill]] }
 0x130   : > { %s582_s27 = scalar_lea.vmem [#allocation19], %s1540_s10  ;;  %s2728_s13 = sld [smem:[#allocation37_spill]] }
 0x131   : > { %s1259_s30 = sshll.u32 %s582_s27, 4  ;;  %s2599_s30 = int_to_ptr.vmem [resolvable:$true] %s1259_s30 }
 0x132   : > { %631 = vrot.lane.b32.xlu0 %v1700_v1, %s2127_s11 }
 0x133   : > { %633 = vrot.lane.b32.xlu1 %v1703_v3, %s2127_s11 }
 0x134   : > { %s1541_s14 = smul.u32 192, %s2726_s25 }
 0x135   : > { %p2730_p3 = scmp.ne.s32.totalorder %s2727_s21, 0 }
 0x136   : > { %629 = vrot.lane.b32.xlu0 %v1702_v2, %s2127_s11  ;;  %s2597_s19 = scalar_lea.hbm %s2728_s13, %s1541_s14 }
 0x137   : > { %635 = vrot.lane.b32.xlu1 %v1705_v4, %s2127_s11  ;;  %s1243_s11 = scalar_lea.sflag [#allocation5], %s2524_s26 }
 0x13a   : > { %646 = vrot.lane.b32.xlu0 %v1700_v1, %s2128_s23 }
 0x13b   : > { %648 = vrot.lane.b32.xlu1 %v1703_v3, %s2128_s23 }
 0x13e   : > { %644 = vrot.lane.b32.xlu0 %v1702_v2, %s2128_s23 }
 0x13f   : > { %650 = vrot.lane.b32.xlu1 %v1705_v4, %s2128_s23  ;;  %s2009_s23 = scalar_lea.vmem %s2599_s30, 192 }
 0x140   : > { %p2010_p9 = scmp.ne.s32.totalorder %s2599_s30, %s2009_s23 }
 0x142   : > { %661 = vrot.lane.b32.xlu0 %v1700_v1, %s2129_s22  ;;  %p2011_p8 = pnand %p2010_p9, %p2730_p3 }
 0x143   : > { %663 = vrot.lane.b32.xlu1 %v1703_v3, %s2129_s22 }
 0x144   : > { %p2012_p11 = pneg %p2011_p8 }
 0x146   : > { %659 = vrot.lane.b32.xlu0 %v1702_v2, %s2129_s22 }
 0x147   : > { %665 = vrot.lane.b32.xlu1 %v1705_v4, %s2129_s22  ;;  %s2136_s22 = smov [#allocation19]  }
 0x14a   : > { %676 = vrot.lane.b32.xlu0 %v1700_v1, %s2130_s28 }
 0x14b   : > { %678 = vrot.lane.b32.xlu1 %v1703_v3, %s2130_s28 }
 0x14e   : > { %674 = vrot.lane.b32.xlu0 %v1702_v2, %s2130_s28 }
 0x14f   : > { %680 = vrot.lane.b32.xlu1 %v1705_v4, %s2130_s28  ;;  %s2013_s28 = sshll.u32 %s2136_s22, 4  ;;  %s2014_s28 = int_to_ptr.vmem [resolvable:$false] %s2013_s28 }
 0x150   : > { %p2016_p6 = scmp.lt.s32.totalorder %s2599_s30, %s2014_s28 }
 0x152   : > { %691 = vrot.lane.b32.xlu0 %v1700_v1, %s2131_s12 }
 0x153   : > { %693 = vrot.lane.b32.xlu1 %v1703_v3, %s2131_s12 }
 0x156   : > { %689 = vrot.lane.b32.xlu0 %v1702_v2, %s2131_s12 }
 0x157   : > { %695 = vrot.lane.b32.xlu1 %v1705_v4, %s2131_s12  ;;  %s2015_s12 = scalar_lea.vmem %s2014_s28, 384 }
 0x158   : > { %p2017_p1 = scmp.lt.s32.totalorder %s2015_s12, %s2009_s23 }
 0x15a   : > { %706 = vrot.lane.b32.xlu0 %v1700_v1, %s2132_s18  ;;  %p2018_p10 = por %p2017_p1, %p2016_p6 }
 0x15b   : > { %708 = vrot.lane.b32.xlu1 %v1703_v3, %s2132_s18 }
 0x15c   : > { %p2019_p13 = pnand %p2018_p10, %p2012_p11 }
 0x15e   : > { %704 = vrot.lane.b32.xlu0 %v1702_v2, %s2132_s18 }
 0x15f   : > { %710 = vrot.lane.b32.xlu1 %v1705_v4, %s2132_s18 }
 0x162   : > { %721 = vrot.lane.b32.xlu0 %v1700_v1, %s2133_s24 }
 0x163   : > { %723 = vrot.lane.b32.xlu1 %v1703_v3, %s2133_s24 }
 0x166   : > { %719 = vrot.lane.b32.xlu0 %v1702_v2, %s2133_s24  ;;  %v828_v2 = vlaneseq }
 0x167   : > { %725 = vrot.lane.b32.xlu1 %v1705_v4, %s2133_s24 }
 0x168   : > { %v829_v3 = vshrl.u32 %v828_v2, 7 }
 0x16a   : > { %v830_v4 = vsub.s32 0, %v829_v3  ;;  %v838_v7 = vsub.s32 2, %v829_v3 }
 0x19c   : > { %v617_v8 = vpop.permute.xlu0 %616 }
 0x19d   : > { %v615_v9 = vpop.permute.xlu1 %614 }
 0x19e   : > { %v623_v14 = vsel %vm622_vm1, %v615_v9, %v617_v8  ;;  %v839_v9 = vrot.slane %v826_v5, %v838_v7 }
 0x1a0   : > { %v619_v10 = vpop.permute.xlu0 %618 }
 0x1a1   : > { %v621_v11 = vpop.permute.xlu1 %620  ;;  %v624_v12 = vsel %vm622_vm1, %v617_v8, %v619_v10  ;;  %v831_v8 = vrot.slane %v826_v5, %v830_v4 }
 0x1a2   : > { %747 = vmatprep.subr.bf16.mxu0 %v624_v12  ;;  %v625_v13 = vsel %vm622_vm1, %v619_v10, %v621_v11 }
 0x1a3   : > { %789 = vmatpush1.bf16.msra.mxu1 %v625_v13  ;;  %748 = vmatpush1.bf16.msra.mxu0 %v623_v14 }
 0x1a4   : > { %v632_v15 = vpop.permute.xlu0 %631  ;;  %790 = vmatprep.subr.bf16.mxu1 %v2125_v0 }
 0x1a5   : > { %v634_v16 = vpop.permute.xlu1 %633 }
 0x1a6   : > { %v639_v17 = vsel %vm637_vm2, %v632_v15, %v634_v16 }
 0x1a7   : > { %749 = vmatprep.subr.bf16.mxu0 %v639_v17 }
 0x1a8   : > { %v630_v18 = vpop.permute.xlu0 %629 }
 0x1a9   : > { %v636_v19 = vpop.permute.xlu1 %635  ;;  %v638_v20 = vsel %vm637_vm2, %v630_v18, %v632_v15 }
 0x1aa   : > { %750 = vmatpush1.bf16.msra.mxu0 %v638_v20  ;;  %v640_v21 = vsel %vm637_vm2, %v634_v16, %v636_v19 }
 0x1ab   : > { %791 = vmatpush1.bf16.msra.mxu1 %v640_v21 }
 0x1ac   : > { %v647_v22 = vpop.permute.xlu0 %646  ;;  %792 = vmatprep.subr.bf16.mxu1 %v2125_v0 }
 0x1ad   : > { %v649_v23 = vpop.permute.xlu1 %648 }
 0x1ae   : > { %v654_v24 = vsel %vm652_vm3, %v647_v22, %v649_v23 }
 0x1af   : > { %751 = vmatprep.subr.bf16.mxu0 %v654_v24 }
 0x1b0   : > { %v645_v25 = vpop.permute.xlu0 %644 }
 0x1b1   : > { %v651_v26 = vpop.permute.xlu1 %650  ;;  %v653_v27 = vsel %vm652_vm3, %v645_v25, %v647_v22 }
 0x1b2   : > { %752 = vmatpush1.bf16.msra.mxu0 %v653_v27  ;;  %v655_v28 = vsel %vm652_vm3, %v649_v23, %v651_v26 }
 0x1b3   : > { %793 = vmatpush1.bf16.msra.mxu1 %v655_v28  ;;  %v2134_v28 = vmov 0.0  }
 0x1b4   : > { %v662_v29 = vpop.permute.xlu0 %661  ;;  %794 = vmatprep.subr.bf16.mxu1 %v2125_v0 }
 0x1b5   : > { %v664_v30 = vpop.permute.xlu1 %663 }
 0x1b6   : > { %v669_v31 = vsel %vm667_vm4, %v662_v29, %v664_v30 }
 0x1b7   : > { %753 = vmatprep.subr.bf16.mxu0 %v669_v31 }
 0x1b8   : > { %v660_v32 = vpop.permute.xlu0 %659 }
 0x1b9   : > { %v666_v33 = vpop.permute.xlu1 %665  ;;  %v668_v34 = vsel %vm667_vm4, %v660_v32, %v662_v29  ;;  %v862_v29 = vld [vmem:[#allocation8] sm:$0xff] }
 0x1ba   : > { %754 = vmatpush1.bf16.msra.mxu0 %v668_v34  ;;  %v670_v35 = vsel %vm667_vm4, %v664_v30, %v666_v33  ;;  %v863_v30 = vmul.f32 256.0, %v862_v29  ;;  %v865_v31 = vmul.f32 2.0, %v862_v29  ;;  %v868_v32 = vmul.f32 %v862_v29, %v862_v29 }
 0x1bb   : > { %795 = vmatpush1.bf16.msra.mxu1 %v670_v35 }
 0x1bc   : > { %v677_v36 = vpop.permute.xlu0 %676  ;;  %796 = vmatprep.subr.bf16.mxu1 %v2125_v0 }
 0x1bd   : > { %v679_v37 = vpop.permute.xlu1 %678 }
 0x1be   : > { %v684_v38 = vsel %vm682_vm5, %v677_v36, %v679_v37 }
 0x1bf   : > { %755 = vmatprep.subr.bf16.mxu0 %v684_v38 }
 0x1c0   : > { %v675_v39 = vpop.permute.xlu0 %674 }
 0x1c1   : > { %v681_v40 = vpop.permute.xlu1 %680  ;;  %v683_v41 = vsel %vm682_vm5, %v675_v39, %v677_v36  ;;  %v869_v36 = vmul.f32 256.0, %v868_v32 }
 0x1c2   : > { %756 = vmatpush1.bf16.msra.mxu0 %v683_v41  ;;  %v685_v42 = vsel %vm682_vm5, %v679_v37, %v681_v40  ;;  %v871_v37 = vld [vmem:[#allocation14] sm:$0xf]  ;;  %v1016_v41 = vld [vmem:[#allocation15] sm:$0xff] }
 0x1c3   : > { %797 = vmatpush1.bf16.msra.mxu1 %v685_v42 }
 0x1c4   : > { %v692_v43 = vpop.permute.xlu0 %691  ;;  %798 = vmatprep.subr.bf16.mxu1 %v2125_v0 }
 0x1c5   : > { %v694_v44 = vpop.permute.xlu1 %693 }
 0x1c6   : > { %v699_v45 = vsel %vm697_vm6, %v692_v43, %v694_v44 }
 0x1c7   : > { %757 = vmatprep.subr.bf16.mxu0 %v699_v45 }
 0x1c8   : > { %v690_v46 = vpop.permute.xlu0 %689 }
 0x1c9   : > { %v696_v47 = vpop.permute.xlu1 %695  ;;  %v698_v48 = vsel %vm697_vm6, %v690_v46, %v692_v43 }
 0x1ca   : > { %758 = vmatpush1.bf16.msra.mxu0 %v698_v48  ;;  %v700_v49 = vsel %vm697_vm6, %v694_v44, %v696_v47 }
 0x1cb   : > { %799 = vmatpush1.bf16.msra.mxu1 %v700_v49 }
 0x1cc   : > { %v707_v50 = vpop.permute.xlu0 %706  ;;  %800 = vmatprep.subr.bf16.mxu1 %v2125_v0 }
 0x1cd   : > { %v709_v51 = vpop.permute.xlu1 %708 }
 0x1ce   : > { %v714_v52 = vsel %vm712_vm7, %v707_v50, %v709_v51 }
 0x1cf   : > { %759 = vmatprep.subr.bf16.mxu0 %v714_v52 }
 0x1d0   : > { %v705_v53 = vpop.permute.xlu0 %704 }
 0x1d1   : > { %v711_v54 = vpop.permute.xlu1 %710  ;;  %v713_v55 = vsel %vm712_vm7, %v705_v53, %v707_v50 }
 0x1d2   : > { %760 = vmatpush1.bf16.msra.mxu0 %v713_v55  ;;  %v715_v56 = vsel %vm712_vm7, %v709_v51, %v711_v54 }
 0x1d3   : > { %801 = vmatpush1.bf16.msra.mxu1 %v715_v56  ;;  %v1181_v56 = vld [vmem:[%s2550_s29] sm:$0xff]  ;;  %s2729_s29 = smov %s2728_s13 }
 0x1d4   : > { %v722_v57 = vpop.permute.xlu0 %721  ;;  %802 = vmatprep.subr.bf16.mxu1 %v2125_v0  ;;  %v834_v0 = vsub.s32 1, %v829_v3  ;;  %v1185_v3 = vld [vmem:[%s536_s0] sm:$0xff] }
 0x1d5   : > { %v724_v58 = vpop.permute.xlu1 %723 }
 0x1d6   : > { %v729_v59 = vsel %vm727_vm8, %v722_v57, %v724_v58  ;;  %v835_v10 = vrot.slane %v826_v5, %v834_v0 }
 0x1d7   : > { %761 = vmatprep.subr.bf16.mxu0 %v729_v59 }
 0x1d8   : > { %v720_v60 = vpop.permute.xlu0 %719 }
 0x1d9   : > { %v726_v61 = vpop.permute.xlu1 %725  ;;  %v728_v62 = vsel %vm727_vm8, %v720_v60, %v722_v57  ;;  %v1175_v57 = vld [vmem:[#allocation9] sm:$0xff] }
 0x1da   : > { %762 = vmatpush1.bf16.msra.mxu0 %v728_v62  ;;  %v730_v1 = vsel %vm727_vm8, %v724_v58, %v726_v61  ;;  %v1182_v58 = vadd.f32 1.0, %v1181_v56  ;;  %v1179_v62 = vld [vmem:[#allocation11] sm:$0xff] }
 0x1db   : > { %803 = vmatpush1.bf16.msra.mxu1 %v730_v1  ;;  %1520 = vmatprep.subr.mxu0 %v2134_v28 }
 0x1dc   : > { %1525 = vmatprep.subr.mxu1 %v2134_v28 }
 0x1dd   : > { %778 = vmatmul.mubr.bf16.vlgmr.msra.gmra.mrb[0].mxu0 %v1491_v63 }
 0x1de   : > { %819 = vmatmul.mubr.bf16.vlgmr.msra.gmra.mrb[0].mxu1 %v1491_v63  ;;  %1522 = vmatprep.mubr.msk.f32.mxu0 %vm2135_vm9, %v2134_v28 }
 0x1df   : > { %1527 = vmatprep.mubr.msk.f32.mxu1 %vm2135_vm9, %v2134_v28 }
 0x2b0   : > { %v2573_v11 = vpop.f32.mrb[0].mxu0 }
 0x2b1   : > { %v843_v12 = vmul.f32 %v831_v8, %v2573_v11  ;;  %v2576_v13 = vpop.f32.mrb[0].mxu1  ;;  %v2578_v6 = vpop.f32.mrb[1].mxu0 }
 0x2b2   : > { %v845_v14 = vmul.f32 %v839_v9, %v2576_v13  ;;  %v844_v15 = vmul.f32 %v835_v10, %v2578_v6  ;;  %v822_v16 = vpop.f32.mrb[1].mxu1  ;;  %v783_v17 = vpop.f32.mrb[2].mxu0 }
 0x2b3   : > { %v851_v18 = vmul.f32 %v843_v12, %v843_v12  ;;  %v823_v19 = vpop.f32.mrb[2].mxu1  ;;  %v784_v20 = vpop.f32.mrb[3].mxu0 }
 0x2b4   : > { %v852_v21 = vmul.f32 %v844_v15, %v844_v15  ;;  %v824_v22 = vpop.f32.mrb[3].mxu1  ;;  %v846_v23 = vadd.f32 %v844_v15, %v843_v12  ;;  %v853_v24 = vmul.f32 %v845_v14, %v845_v14 }
 0x2b6   : > { %v847_v25 = vadd.f32 %v846_v23, %v845_v14  ;;  %v854_v26 = vadd.f32 %v852_v21, %v851_v18 }
 0x2b8   : > { %848 = vadd.xlane.f32.xlu0 %v847_v25  ;;  %v855_v27 = vadd.f32 %v854_v26, %v853_v24 }
 0x2ba   : > { %856 = vadd.xlane.f32.xlu1 %v855_v27 }
 0x345   : > { %v849_v33 = vpop.xlane.xlu0 %848 }
 0x346   : > { %v864_v34 = vadd.f32 %v863_v30, %v849_v33  ;;  %v866_v35 = vmul.f32 %v865_v31, %v849_v33 }
 0x347   : > { %v857_v38 = vpop.xlane.xlu1 %856 }
 0x348   : > { %v867_v39 = vadd.f32 %v866_v35, %v857_v38  ;;  %1521 = vmatpush3.msra.mxu0 %v864_v34 }
 0x349   : > { %1523 = vmatmul.mubr.msk.f32.vlgmr.msra.gmra.mrb[4].mxu0 %vm872_vm10, %v871_v37  ;;  %1530 = vmatprep.subr.mxu0 %v2134_v28 }
 0x34a   : > { %v870_v40 = vadd.f32 %v869_v36, %v867_v39  ;;  %1532 = vmatprep.mubr.msk.f32.mxu0 %vm2135_vm9, %v2134_v28 }
 0x34c   : > { %1526 = vmatpush3.msra.mxu1 %v870_v40 }
 0x34d   : > { %1528 = vmatmul.mubr.msk.f32.vlgmr.msra.gmra.mrb[4].mxu1 %vm872_vm10, %v871_v37  ;;  %1535 = vmatprep.subr.mxu1 %v2134_v28 }
 0x34e   : > { %1537 = vmatprep.mubr.msk.f32.mxu1 %vm2135_vm9, %v2134_v28 }
 0x41c   : > { %v942_v42 = vpop.f32.mrb[4].mxu0 }
 0x41d   : > { %1531 = vmatpush3.msk.msra.mxu0 %vm1021_vm11, %v942_v42  ;;  %v1524_v43 = vpop.f32.mrb[5].mxu0 }
 0x41e   : > { %1533 = vmatmul.mubr.msk.f32.vlgmr.msra.gmra.mrb[6].mxu0 %vm1017_vm12, %v1016_v41 }
 0x420   : > { %v1012_v44 = vpop.f32.mrb[4].mxu1 }
 0x421   : > { %1536 = vmatpush3.msk.msra.mxu1 %vm1021_vm11, %v1012_v44  ;;  %v1529_v45 = vpop.f32.mrb[5].mxu1 }
 0x422   : > { %1538 = vmatmul.mubr.msk.f32.vlgmr.msra.gmra.mrb[6].mxu1 %vm1017_vm12, %v1016_v41 }
 0x4f1   : > { %v1091_v46 = vpop.f32.mrb[6].mxu0 }
 0x4f2   : > { %v1095_v47 = vmul.f32 0.001953125, %v1091_v46  ;;  %v1534_v48 = vpop.f32.mrb[7].mxu0 }
 0x4f4   : > { %v1170_v49 = vmul.f32 %v1095_v47, %v1095_v47  ;;  %v1177_v60 = vsub.f32 %v862_v29, %v1095_v47 }
 0x4f5   : > { %v1165_v50 = vpop.f32.mrb[6].mxu1 }
 0x4f6   : > { %v1169_v51 = vmul.f32 0.001953125, %v1165_v50  ;;  %v1539_v52 = vpop.f32.mrb[7].mxu1 }
 0x4f8   : > { %v1171_v53 = vsub.f32 %v1169_v51, %v1170_v49 }
 0x4fa   : > { %v1172_v54 = vmax.f32 %v1171_v53, 0.0 }
 0x4fc   : > { %v1173_v55 = vadd.f32 1e-05, %v1172_v54 }
 0x4fe   : > { %1709 = vrsqrt.f32 %v1173_v55 }
 0x508   : > { %v1710_v59 = vpop.eup %1709 }
 0x509   : > { %v1176_v61 = vmul.f32 %v1710_v59, %v1175_v57 }
 0x50b   : > { %v1183_v63 = vmul.f32 %v1182_v58, %v1176_v61  ;;  %v1178_v1 = vmul.f32 %v1177_v60, %v1176_v61 }
 0x50d   : > { %1192 = vperm.xlu0 %1698, %v1183_v63   ;;  %v1180_v2 = vadd.f32 %v1179_v62, %v1178_v1 }
 0x50f   : > { %v1184_v4 = vmul.f32 %v1182_v58, %v1180_v2 }
 0x511   : > { %v1186_v5 = vadd.f32 %v1185_v3, %v1184_v4 }
 0x513   : > { %1200 = vperm.xlu1 %1699, %v1186_v5  }
 0x58c   : > { %v1193_v7 = vpop.permute.xlu0 %1192 }
 0x58d   : > { %v1195_v0 = vmul.f32 %v1193_v7, %v2573_v11  ;;  %v1196_v8 = vmul.f32 %v1193_v7, %v2578_v6  ;;  %v1197_v9 = vmul.f32 %v1193_v7, %v2576_v13 }
 0x592   : > { %v1201_v10 = vpop.permute.xlu1 %1200 }
 0x593   : > { %v1203_v12 = vadd.f32 %v1201_v10, %v1195_v0  ;;  %v1204_v14 = vadd.f32 %v1201_v10, %v1196_v8  ;;  %v1205_v15 = vadd.f32 %v1201_v10, %v1197_v9 }
 0x595   : > { %v1501_v16 = vmul.f32 -1.442695, %v1203_v12  ;;  %v1502_v17 = vmul.f32 -1.442695, %v1204_v14  ;;  %v1503_v18 = vmul.f32 -1.442695, %v1205_v15 }
 0x597   : > { %1711 = vpow2.f32 %v1501_v16 }
 0x598   : > { %1713 = vpow2.f32 %v1502_v17 }
 0x599   : > { %1715 = vpow2.f32 %v1503_v18 }
 0x5a1   : > { %v1712_v19 = vpop.eup %1711 }
 0x5a2   : > { %v1714_v20 = vpop.eup %1713  ;;  %v1215_v21 = vadd.f32 1.0, %v1712_v19 }
 0x5a3   : > { %v1716_v11 = vpop.eup %1715  ;;  %v1216_v22 = vadd.f32 1.0, %v1714_v20 }
 0x5a4   : > { %v1217_v6 = vadd.f32 1.0, %v1716_v11  ;;  %1717 = vrcp.f32 %v1215_v21 }
 0x5a5   : > { %1719 = vrcp.f32 %v1216_v22 }
 0x5a6   : > { %1721 = vrcp.f32 %v1217_v6 }
 0x5ae   : > { %v1718_v13 = vpop.eup %1717 }
 0x5af   : > { %v1720_v23 = vpop.eup %1719  ;;  %v1224_v24 = vmul.f32 %v1718_v13, %v1203_v12 }
 0x5b0   : > { %v1722_v25 = vpop.eup %1721  ;;  %v1225_v26 = vmul.f32 %v1720_v23, %v1204_v14 }
 0x5b1   : > { %v1226_v27 = vmul.f32 %v1722_v25, %v1205_v15 }
 0x5b2   : > { %v1510_v28 = vpack.c.bf16 %v1225_v26, %v1224_v24 }
 0x5b3   : > { %v1511_v29 = vpack.c.bf16 %v1226_v27, %v1226_v27 }
 0x5b4   : > { %1240 = vst [vmem:[%s582_s27] sm:$0xff] %v1510_v28 }
 0x5b5   : > { %1241 = vst [vmem:[%s582_s27 + $0x8] sm:$0xf] %v1511_v29 }
 0x5b6   : > { %2022 = shalt.err (!%p2019_p13)
}
 0x5b7   : > { %s2023_s26 = scalar_lea.hbm %s2597_s19, 192  ;;  %s2027_s0 = scalar_lea.hbm %s2729_s29, 384 }
 0x5b8   : > { %p2024_p4 = scmp.ne.s32.totalorder %s2597_s19, %s2023_s26  ;;  %p2028_p7 = scmp.lt.u32.totalorder %s2597_s19, %s2729_s29 }
 0x5b9   : > { %p2029_p0 = scmp.lt.u32.totalorder %s2027_s0, %s2023_s26  ;;  %p2031_p9 = scmp.lt.u32.totalorder %s2023_s26, %s2597_s19 }
 0x5ba   : > { %p2025_p2 = pnand %p2024_p4, %p2730_p3 }
 0x5bb   : > { %p2030_p12 = por %p2029_p0, %p2028_p7 }
 0x5bc   : > { %p2026_p5 = pneg %p2025_p2 }
 0x5bd   : > { %p2032_p8 = por %p2031_p9, %p2030_p12 }
 0x5bf   : > { %p2033_p11 = pnand %p2032_p8, %p2026_p5 }
 0x5c1   : > { %2036 = shalt.err (!%p2033_p11)
}
 0x5c2   : > { %1576 = dma.vmem_to_hbm [thread:$0]  (%p2730_p3), %s2599_s30, 192, %s2597_s19, %s1243_s11  }
 0x5c3 PF: > { %s2731_s14 = sld [smem:[#allocation27_spill]]  ;;  %s2732_s27 = sld [smem:[#allocation35_spill]] }
 0x5c4   : > { %s2733_s16 = sld [smem:[#allocation30_spill]] }
 0x5c9   : > { %s1271_s20 = sand.u32 1, %s2731_s14   ;;  %p2734_p6 = scmp.ne.s32.totalorder %s2732_s27, 0 }
 0x5ca   : > { %p2735_p1 = scmp.ge.s32.totalorder %s2733_s16, 2  ;;  %s1272_s13 = scalar_lea.sflag [#allocation5], %s1271_s20 }
 0x5cc   : > { %p1611_p10 = pnand %p2735_p1, %p2734_p6 }
 0x5ce   : > { %2086 = dma.done.wait (!%p1611_p10), %s1272_s13, 192  }
 0x5cf   : > { %2088 = vsyncadd (!%p1611_p10), %s1272_s13, 4294967104  ;;  %s30_s18 = sadd.s32 1, %s2733_s16   ;;  %s2736_s13 = sld [smem:[#allocation28_spill]] }
 0x5d0   : > { %p27_p13 = scmp.ge.s32.totalorder %s30_s18, 4   ;;  %s2737_s21 = sld [smem:[#allocation34_spill]] }
 0x5d1   : > { %s2738_s23 = sld [smem:[#allocation31_spill]]  ;;  %s2739_s14 = smov %s2099_s15 }
 0x5d2   : > { %s2741_s16 = smov %s2107_s17  ;;  %29 = sbr.rel (!%p27_p13) target bundleno = 13 (0xd), region = 159 }
 0x5d6   : > { %s2740_s15 = smov %s2737_s21 }
 0x5d7   : > { %s2742_s17 = smov %s2738_s23 }
 0x5d9   :  { %1277 = vsyncpa [#allocation4], 1 }
 0x5da   :  { %1279 = vsyncpa [#allocation4 + $0x1], 1 }
 0x5db   :  { %1280 = vsyncpa [#allocation7], 1 }
 0x5dc   :  { %1281 = vsyncpa [#allocation10], 1 }
 0x5dd   :  { %1282 = vsyncpa [#allocation13], 1 }
 0x5de   :  { %1283 = vsyncpa [#allocation16], 1 }
 0x5df   :  { %1284 = vsyncpa [#allocation5], 1 }
 0x5e0   :  { %1286 = vsyncpa [#allocation5 + $0x1], 1 }

// kernel: tpu_custom_call.1
= control target key start
LH: loop header
LB: loop body
LE: loop exit
PB: predicated region body
PF: predicated region fallthrough
CT: control target
= control target key end

     0   :  { %s2646_s0 = inlined_call_operand.hbm [shape: bf16[2,16,432], index: 0, kind: input, shape index: {}]   ;;  %s2647_s1 = inlined_call_operand.hbm [shape: bf16[8,144], index: 1, kind: input, shape index: {}]   ;;  %s2648_s2 = inlined_call_operand.hbm [shape: f32[8,1], index: 2, kind: input, shape index: {}]   ;;  %s2649_s3 = inlined_call_operand.hbm [shape: f32[8,1], index: 3, kind: input, shape index: {}]   ;;  %s2650_s4 = inlined_call_operand.hbm [shape: f32[8,1], index: 4, kind: input, shape index: {}]   ;;  %s2651_s5 = inlined_call_operand.hbm [shape: f32[1,384], index: 5, kind: input, shape index: {}]   ;;  %s2652_s6 = inlined_call_operand.hbm [shape: f32[4,8], index: 6, kind: input, shape index: {}]   ;;  %s2653_s7 = inlined_call_operand.hbm [shape: f32[8,4], index: 7, kind: input, shape index: {}]   ;;  %s2654_s8 = inlined_call_operand.hbm [shape: f32[2,8,1], index: 8, kind: input, shape index: {}]   ;;  %s2655_s9 = inlined_call_operand.hbm [shape: f32[2,8,1], index: 9, kind: input, shape index: {}]   ;;  %s2656_s10 = inlined_call_operand.hbm [shape: bf16[2,8,384], index: 10, kind: output, shape index: {}]  }
   0x1   :  { %2683 = sst [smem:[#allocation36_spill]] %s2646_s0 }
   0x2   :  { %2684 = sst [smem:[#allocation37_spill]] %s2656_s10 }
   0x3   :  { %15 = vsyncpa [#allocation4], 0 }
   0x4   :  { %17 = vsyncpa [#allocation4 + $0x1], 0 }
   0x5   :  { %18 = vsyncpa [#allocation7], 0 }
   0x6   :  { %19 = vsyncpa [#allocation10], 0 }
   0x7   :  { %20 = vsyncpa [#allocation13], 0 }
   0x8   :  { %21 = vsyncpa [#allocation16], 0 }
   0x9   :  { %22 = vsyncpa [#allocation5], 0 }
   0xa   :  { %24 = vsyncpa [#allocation5 + $0x1], 0  ;;  %s2192_s13 = smov 0   ;;  %s2194_s14 = smov 0  }
   0xb   :  { %s2196_s15 = smov 0   ;;  %s2198_s16 = smov 0  }
   0xc   :  { %s2200_s17 = smov 0   ;;  %s2202_s18 = smov 0  }
   0xd LB: > { %2685 = sst [smem:[#allocation27_spill]] %s2091_s13  ;;  %s2223_s19 = sadd.s32 4294967295, %s2111_s18   ;;  %s2111_s18 = sphi %s2202_s18, %s30_s18   ;;  %s2107_s17 = sphi %s2200_s17, %s2742_s17   ;;  %s2103_s16 = sphi %s2198_s16, %s2741_s16   ;;  %s2099_s15 = sphi %s2196_s15, %s2740_s15   ;;  %s2095_s14 = sphi %s2194_s14, %s2739_s14   ;;  %s2091_s13 = sphi %s2192_s13, %s2736_s13  }
   0xe   : > { %2686 = sst [smem:[#allocation28_spill]] %s2095_s14  ;;  %s1458_s20 = sadd.s32 4294967294, %s2111_s18  }
   0xf   : > { %2687 = sst [smem:[#allocation29_spill]] %s2103_s16  ;;  %s42_s21 = sadd.s32 1, %s2107_s17 }
  0x10   : > { %2688 = sst [smem:[#allocation30_spill]] %s2111_s18  ;;  %s49_s22 = sadd.s32 1, %s2099_s15 }
  0x11   : > { %p44_p0 = scmp.ge.s32.totalorder %s42_s21, 2  ;;  %p56_p1 = scmp.ne.s32.totalorder %s2099_s15, %s2095_s14 }
  0x12   : > { %p57_p2 = scmp.eq.s32.totalorder %s2111_s18, 0  ;;  %p62_p3 = scmp.ne.s32.totalorder %s2095_s14, %s2091_s13 }
  0x13   : > { %s2744_s21 = smov (%p44_p0, %s42_s21), 0  ;;  %p2657_p5 = scmp.eq.s32.totalorder %s2223_s19, 0 }
  0x14   : > { %2689 = sst [smem:[#allocation31_spill]] %s2744_s21  ;;  %p2235_p4 = por %p57_p2, %p56_p1 }
  0x15   : > { %s46_s24 = ssub.s32 %s2107_s17, %s2744_s21  ;;  %p311_p6 = scmp.eq.s32.totalorder %s2223_s19, 1 }
  0x16   : > { %p47_p7 = scmp.eq.s32.totalorder %s46_s24, 0  ;;  %p2245_p8 = por %p2657_p5, %p62_p3 }
  0x17   : > { %p2249_p9 = por %p311_p6, %p56_p1  ;;  %p317_p10 = scmp.eq.s32.totalorder %s1458_s20, 1 }
  0x18   : > { %s2691_s25 = scalar_select %p2245_p8, 1, 0 }
  0x19   : > { %s2693_s26 = scalar_select %p2249_p9, 1, 0 }
  0x1a   : > { %2692 = sst [smem:[#allocation32_spill]] %s2691_s25  ;;  %p2256_p11 = por %p317_p10, %p62_p3 }
  0x1b   : > { %2694 = sst [smem:[#allocation33_spill]] %s2693_s26  ;;  %p1459_p12 = scmp.ge.s32.totalorder %s2111_s18, 1 }
  0x1c   : > { %s2254_s27 = scalar_select %p47_p7, %s2099_s15, %s49_s22  }
  0x1d   : > { %s2696_s28 = scalar_select %p2256_p11, 1, 0 }
  0x1e   : > { %2695 = sst [smem:[#allocation34_spill]] %s2254_s27  ;;  %p324_p13 = scmp.lt.s32.totalorder %s2111_s18, 3 }
  0x1f   : > { %2697 = sst [smem:[#allocation35_spill]] %s2696_s28  ;;  %p1621_p2 = scmp.lt.s32.totalorder %s2111_s18, 2 }
  0x20   : > { %p2264_p5 = pnand %p1459_p12, %p324_p13  ;;  %s423_s30 = sand.u32 1, %s2111_s18  }
  0x21   : > { %s2662_s11 = sand.u32 1, %s2099_s15   ;;  %s1509_s20 = sshll.u32 %s2107_s17, 9 }
  0x22   : > { %s2698_s29 = scalar_select %p2264_p5, 1, 0 }
  0x23   : > { %p1578_p1 = pneg %p2264_p5  ;;  %s1468_s12 = sshll.u32 %s2662_s11, 5 }
  0x24   : > { %p2699_p3 = scmp.eq.s32.totalorder %s2223_s19, 0  ;;  %s2701_s0 = sld [smem:[#allocation36_spill]] }
  0x25   : > { %s427_s18 = scalar_lea.vmem [#allocation3], %s1468_s12  ;;  %p2288_p7 = pnand %p1621_p2, %p2235_p4 }
  0x26   : > { %p2277_p6 = pnand %p1578_p1, %p2699_p3  ;;  %s434_s28 = sshll.u32 %s427_s18, 4  ;;  %s2292_s28 = int_to_ptr.vmem [resolvable:$true] %s434_s28 }
  0x27   : > { %s2702_s11 = scalar_select %p2288_p7, 1, 0 }
  0x28   : > { %s2700_s22 = scalar_select %p2277_p6, 1, 0 }
  0x29   : > { %s2294_s13 = scalar_lea.sflag [#allocation4], %s423_s30  ;;  %p2300_p12 = pneg %p2288_p7 }
  0x2a   : > { %s2284_s27 = scalar_lea.hbm %s2701_s0, %s1509_s20  ;;  %s1728_s12 = scalar_lea.hbm %s2701_s0, 1024 }
  0x2b   : > { %s1723_s10 = scalar_lea.hbm %s2284_s27, 512  ;;  %p1729_p4 = scmp.lt.u32.totalorder %s2284_s27, %s2701_s0 }
  0x2c   : > { %p1724_p10 = scmp.ne.s32.totalorder %s2284_s27, %s1723_s10  ;;  %p1730_p2 = scmp.lt.u32.totalorder %s1728_s12, %s1723_s10 }
  0x2d   : > { %s2703_s21 = scalar_select %p2300_p12, 1, 0 }
  0x2e   : > { %p1726_p13 = pnand %p2300_p12, %p1724_p10  ;;  %p1731_p3 = por %p1730_p2, %p1729_p4 }
  0x2f   : > { %p1732_p0 = scmp.lt.u32.totalorder %s1723_s10, %s2284_s27 }
  0x30   : > { %p1727_p1 = pneg %p1726_p13 }
  0x31   : > { %p1733_p11 = por %p1732_p0, %p1731_p3 }
  0x33   : > { %p1734_p9 = pnand %p1733_p11, %p1727_p1 }
  0x35   : > { %1737 = shalt.err (!%p1734_p9)
}
  0x36   : > { %s1738_s30 = scalar_lea.vmem %s2292_s28, 512  ;;  %s2113_s18 = smov [#allocation3]  }
  0x37   : > { %p1739_p10 = scmp.ne.s32.totalorder %s2292_s28, %s1738_s30  ;;  %s1743_s23 = sshll.u32 %s2113_s18, 4  ;;  %s1744_s23 = int_to_ptr.vmem [resolvable:$false] %s1743_s23 }
  0x38   : > { %s1745_s20 = scalar_lea.vmem %s1744_s23, 1024  ;;  %p1746_p5 = scmp.lt.s32.totalorder %s2292_s28, %s1744_s23 }
  0x39   : > { %p1741_p13 = pnand %p1739_p10, %p2300_p12  ;;  %p1747_p6 = scmp.lt.s32.totalorder %s1745_s20, %s1738_s30 }
  0x3b   : > { %p1742_p8 = pneg %p1741_p13  ;;  %p1748_p4 = por %p1747_p6, %p1746_p5 }
  0x3d   : > { %p1749_p2 = pnand %p1748_p4, %p1742_p8 }
  0x3f   : > { %1752 = shalt.err (!%p1749_p2)
}
  0x40   : > { %s2114_s10 = smov 256   ;;  %s2115_s12 = smov 16  }
  0x41   : > { %1603 = dma.hbm_to_vmem [thread:$0]  (!%p2288_p7), %s2284_s27, 512, %s2292_s28, %s2294_s13, %s2114_s10, %s2114_s10, %s2115_s12  }
  0x42   : > { %s2116_s24 = smov [#allocation6]   ;;  %s2117_s18 = smov [#allocation9]  }
  0x43   : > { %s340_s0 = sshll.u32 %s2116_s24, 4  ;;  %s366_s26 = sshll.u32 %s2117_s18, 4  ;;  %s341_s0 = int_to_ptr.vmem [resolvable:$true] %s340_s0  ;;  %s367_s26 = int_to_ptr.vmem [resolvable:$true] %s366_s26 }
  0x44   : > { %s1753_s30 = scalar_lea.hbm %s2647_s1, 128  ;;  %p2704_p8 = scmp.ne.s32.totalorder %s2700_s22, 0 }
  0x45   : > { %p1754_p5 = scmp.ne.s32.totalorder %s2647_s1, %s1753_s30  ;;  %p1760_p6 = scmp.lt.u32.totalorder %s1753_s30, %s2647_s1 }
  0x46   : > { %p2332_p9 = pneg %p2704_p8 }
  0x48   : > { %s2705_s14 = scalar_select %p2332_p9, 1, 0 }
  0x49   : > { %p1756_p11 = pnand %p2332_p9, %p1754_p5 }
  0x4b   : > { %p1757_p0 = pneg %p1756_p11 }
  0x4d   : > { %p1762_p1 = pnand %p1760_p6, %p1757_p0 }
  0x4f   : > { %1765 = shalt.err (!%p1762_p1)
}
  0x50   : > { %s1766_s16 = scalar_lea.vmem %s341_s0, 128  ;;  %p1774_p4 = scmp.lt.s32.totalorder %s341_s0, %s341_s0 }
  0x51   : > { %p1767_p3 = scmp.ne.s32.totalorder %s341_s0, %s1766_s16  ;;  %p1775_p2 = scmp.lt.s32.totalorder %s1766_s16, %s1766_s16 }
  0x53   : > { %p1769_p10 = pnand %p1767_p3, %p2332_p9  ;;  %p1776_p7 = por %p1775_p2, %p1774_p4 }
  0x55   : > { %p1770_p13 = pneg %p1769_p10 }
  0x57   : > { %p1777_p12 = pnand %p1776_p7, %p1770_p13 }
  0x59   : > { %1780 = shalt.err (!%p1777_p12)
}
  0x5a   : > { %1581 = dma.hbm_to_vmem [thread:$0]  (!%p2704_p8), %s2647_s1, 128, %s341_s0, [#allocation7]  }
  0x5b   : > { %s1781_s18 = scalar_lea.hbm %s2649_s3, 128 }
  0x5c   : > { %p1782_p5 = scmp.ne.s32.totalorder %s2649_s3, %s1781_s18  ;;  %p1788_p12 = scmp.lt.u32.totalorder %s1781_s18, %s2649_s3 }
  0x5e   : > { %p1784_p11 = pnand %p1782_p5, %p2332_p9 }
  0x60   : > { %p1785_p7 = pneg %p1784_p11 }
  0x62   : > { %p1790_p0 = pnand %p1788_p12, %p1785_p7 }
  0x64   : > { %1793 = shalt.err (!%p1790_p0)
}
  0x65   : > { %s1794_s28 = scalar_lea.vmem %s367_s26, 128  ;;  %p1802_p10 = scmp.lt.s32.totalorder %s367_s26, %s367_s26 }
  0x66   : > { %p1795_p6 = scmp.ne.s32.totalorder %s367_s26, %s1794_s28  ;;  %p1803_p13 = scmp.lt.s32.totalorder %s1794_s28, %s1794_s28 }
  0x68   : > { %p1797_p1 = pnand %p1795_p6, %p2332_p9  ;;  %p1804_p4 = por %p1803_p13, %p1802_p10 }
  0x6a   : > { %p1798_p3 = pneg %p1797_p1 }
  0x6c   : > { %p1805_p2 = pnand %p1804_p4, %p1798_p3 }
  0x6e   : > { %1808 = shalt.err (!%p1805_p2)
}
  0x6f   : > { %1587 = dma.hbm_to_vmem [thread:$0]  (!%p2704_p8), %s2649_s3, 128, %s367_s26, [#allocation10]  }
  0x70   : > { %s2118_s25 = smov [#allocation12]   ;;  %s2706_s12 = sand.u32 1, %s2099_s15  }
  0x71   : > { %s390_s10 = sshll.u32 %s2118_s25, 4  ;;  %s2368_s24 = sshll.u32 %s2706_s12, 3  ;;  %s391_s10 = int_to_ptr.vmem [resolvable:$true] %s390_s10 }
  0x72   : > { %s1809_s30 = scalar_lea.hbm %s2651_s5, 48 }
  0x73   : > { %p1810_p5 = scmp.ne.s32.totalorder %s2651_s5, %s1809_s30  ;;  %p1816_p12 = scmp.lt.u32.totalorder %s1809_s30, %s2651_s5 }
  0x75   : > { %p1812_p11 = pnand %p1810_p5, %p2332_p9 }
  0x77   : > { %p1813_p7 = pneg %p1812_p11 }
  0x79   : > { %p1818_p0 = pnand %p1816_p12, %p1813_p7 }
  0x7b   : > { %1821 = shalt.err (!%p1818_p0)
}
  0x7c   : > { %s1822_s26 = scalar_lea.vmem %s391_s10, 48  ;;  %s1829_s16 = scalar_lea.vmem %s391_s10, 64 }
  0x7d   : > { %p1823_p6 = scmp.ne.s32.totalorder %s391_s10, %s1822_s26  ;;  %p1830_p10 = scmp.lt.s32.totalorder %s391_s10, %s391_s10 }
  0x7e   : > { %p1831_p13 = scmp.lt.s32.totalorder %s1829_s16, %s1822_s26 }
  0x7f   : > { %p1825_p1 = pnand %p1823_p6, %p2332_p9 }
  0x80   : > { %p1832_p4 = por %p1831_p13, %p1830_p10 }
  0x81   : > { %p1826_p3 = pneg %p1825_p1 }
  0x83   : > { %p1833_p2 = pnand %p1832_p4, %p1826_p3 }
  0x85   : > { %1836 = shalt.err (!%p1833_p2)
}
  0x86   : > { %1593 = dma.hbm_to_vmem [thread:$0]  (!%p2704_p8), %s2651_s5, 48, %s391_s10, [#allocation13]  }
  0x87   : > { %s2681_s18 = sshll.u32 %s2107_s17, 7  ;;  %s448_s23 = scalar_lea.vmem [#allocation17], %s2368_s24 }
  0x88   : > { %s456_s30 = sshll.u32 %s448_s23, 4  ;;  %s454_s28 = scalar_lea.hbm %s2654_s8, %s2681_s18  ;;  %s457_s30 = int_to_ptr.vmem [resolvable:$true] %s456_s30 }
  0x89   : > { %s1837_s0 = scalar_lea.hbm %s454_s28, 128  ;;  %p2707_p11 = scmp.ne.s32.totalorder %s2703_s21, 0 }
  0x8a   : > { %p1838_p5 = scmp.ne.s32.totalorder %s454_s28, %s1837_s0  ;;  %s1842_s25 = scalar_lea.hbm %s2654_s8, 256 }
  0x8b   : > { %p1843_p0 = scmp.lt.u32.totalorder %s454_s28, %s2654_s8  ;;  %p1844_p6 = scmp.lt.u32.totalorder %s1842_s25, %s1837_s0 }
  0x8c   : > { %p1840_p7 = pnand %p1838_p5, %p2707_p11  ;;  %p1846_p3 = scmp.lt.u32.totalorder %s1837_s0, %s454_s28 }
  0x8d   : > { %p1845_p1 = por %p1844_p6, %p1843_p0 }
  0x8e   : > { %p1841_p12 = pneg %p1840_p7 }
  0x8f   : > { %p1847_p10 = por %p1846_p3, %p1845_p1 }
  0x91   : > { %p1848_p13 = pnand %p1847_p10, %p1841_p12 }
  0x93   : > { %1851 = shalt.err (!%p1848_p13)
}
  0x94   : > { %s1852_s23 = scalar_lea.vmem %s457_s30, 128  ;;  %s2119_s20 = smov [#allocation17]  }
  0x95   : > { %p1853_p4 = scmp.ne.s32.totalorder %s457_s30, %s1852_s23  ;;  %s1857_s27 = sshll.u32 %s2119_s20, 4  ;;  %s1858_s27 = int_to_ptr.vmem [resolvable:$false] %s1857_s27 }
  0x96   : > { %s1859_s26 = scalar_lea.vmem %s1858_s27, 256  ;;  %p1860_p7 = scmp.lt.s32.totalorder %s457_s30, %s1858_s27 }
  0x97   : > { %p1855_p2 = pnand %p1853_p4, %p2707_p11  ;;  %p1861_p8 = scmp.lt.s32.totalorder %s1859_s26, %s1852_s23 }
  0x99   : > { %p1856_p5 = pneg %p1855_p2  ;;  %p1862_p9 = por %p1861_p8, %p1860_p7 }
  0x9b   : > { %p1863_p0 = pnand %p1862_p9, %p1856_p5 }
  0x9d   : > { %1866 = shalt.err (!%p1863_p0)
}
  0x9e   : > { %p2708_p6 = scmp.ne.s32.totalorder %s2702_s11, 0  ;;  %s2120_s0 = smov [#allocation8]  }
  0x9f   : > { %s353_s16 = sshll.u32 %s2120_s0, 4  ;;  %s2121_s25 = smov [#allocation11]   ;;  %s354_s16 = int_to_ptr.vmem [resolvable:$true] %s353_s16 }
  0xa0   : > { %1606 = dma.hbm_to_vmem [thread:$0]  (!%p2708_p6), %s454_s28, 128, %s457_s30, %s2294_s13  }
  0xa1   : > { %s379_s12 = sshll.u32 %s2121_s25, 4  ;;  %s1867_s27 = scalar_lea.hbm %s2648_s2, 128  ;;  %s2408_s12 = int_to_ptr.vmem [resolvable:$true] %s379_s12 }
  0xa2   : > { %p1868_p8 = scmp.ne.s32.totalorder %s2648_s2, %s1867_s27  ;;  %p2709_p9 = scmp.ne.s32.totalorder %s2705_s14, 0 }
  0xa3   : > { %p1874_p3 = scmp.lt.u32.totalorder %s1867_s27, %s2648_s2 }
  0xa4   : > { %p1870_p12 = pnand %p1868_p8, %p2709_p9 }
  0xa6   : > { %p1871_p1 = pneg %p1870_p12 }
  0xa8   : > { %p1876_p10 = pnand %p1874_p3, %p1871_p1 }
  0xaa   : > { %1879 = shalt.err (!%p1876_p10)
}
  0xab   : > { %s1880_s28 = scalar_lea.vmem %s354_s16, 128  ;;  %p1888_p5 = scmp.lt.s32.totalorder %s354_s16, %s354_s16 }
  0xac   : > { %p1881_p13 = scmp.ne.s32.totalorder %s354_s16, %s1880_s28  ;;  %p1889_p7 = scmp.lt.s32.totalorder %s1880_s28, %s1880_s28 }
  0xae   : > { %p1883_p4 = pnand %p1881_p13, %p2709_p9  ;;  %p1890_p0 = por %p1889_p7, %p1888_p5 }
  0xb0   : > { %p1884_p2 = pneg %p1883_p4 }
  0xb2   : > { %p1891_p6 = pnand %p1890_p0, %p1884_p2 }
  0xb4   : > { %1894 = shalt.err (!%p1891_p6)
}
  0xb5   : > { %p2710_p8 = scmp.ne.s32.totalorder %s2700_s22, 0  ;;  %s1895_s20 = scalar_lea.hbm %s2650_s4, 128 }
  0xb6   : > { %p1896_p12 = scmp.ne.s32.totalorder %s2650_s4, %s1895_s20  ;;  %p1902_p6 = scmp.lt.u32.totalorder %s1895_s20, %s2650_s4 }
  0xb7   : > { %1584 = dma.hbm_to_vmem [thread:$0]  (!%p2710_p8), %s2648_s2, 128, %s354_s16, [#allocation7]  }
  0xb8   : > { %p1898_p1 = pnand %p1896_p12, %p2709_p9 }
  0xba   : > { %p1899_p3 = pneg %p1898_p1 }
  0xbc   : > { %p1904_p10 = pnand %p1902_p6, %p1899_p3 }
  0xbe   : > { %1907 = shalt.err (!%p1904_p10)
}
  0xbf   : > { %s1908_s16 = scalar_lea.vmem %s2408_s12, 128  ;;  %p1916_p5 = scmp.lt.s32.totalorder %s2408_s12, %s2408_s12 }
  0xc0   : > { %p1909_p13 = scmp.ne.s32.totalorder %s2408_s12, %s1908_s16  ;;  %p1917_p7 = scmp.lt.s32.totalorder %s1908_s16, %s1908_s16 }
  0xc2   : > { %p1911_p4 = pnand %p1909_p13, %p2709_p9  ;;  %p1918_p0 = por %p1917_p7, %p1916_p5 }
  0xc4   : > { %p1912_p2 = pneg %p1911_p4 }
  0xc6   : > { %p1919_p12 = pnand %p1918_p0, %p1912_p2 }
  0xc8   : > { %1922 = shalt.err (!%p1919_p12)
}
  0xc9   : > { %1590 = dma.hbm_to_vmem [thread:$0]  (!%p2710_p8), %s2650_s4, 128, %s2408_s12, [#allocation10]  }
  0xca   : > { %s2122_s25 = smov [#allocation14]   ;;  %s2123_s10 = smov [#allocation15]  }
  0xcb   : > { %s401_s18 = sshll.u32 %s2122_s25, 4  ;;  %s412_s20 = sshll.u32 %s2123_s10, 4  ;;  %s402_s18 = int_to_ptr.vmem [resolvable:$true] %s401_s18  ;;  %s2451_s20 = int_to_ptr.vmem [resolvable:$true] %s412_s20 }
  0xcc   : > { %s1923_s26 = scalar_lea.hbm %s2652_s6, 64 }
  0xcd   : > { %p1924_p1 = scmp.ne.s32.totalorder %s2652_s6, %s1923_s26  ;;  %p1930_p10 = scmp.lt.u32.totalorder %s1923_s26, %s2652_s6 }
  0xcf   : > { %p1926_p3 = pnand %p1924_p1, %p2709_p9 }
  0xd1   : > { %p1927_p6 = pneg %p1926_p3 }
  0xd3   : > { %p1932_p13 = pnand %p1930_p10, %p1927_p6 }
  0xd5   : > { %1935 = shalt.err (!%p1932_p13)
}
  0xd6   : > { %s1936_s0 = scalar_lea.vmem %s402_s18, 64  ;;  %p1944_p7 = scmp.lt.s32.totalorder %s402_s18, %s402_s18 }
  0xd7   : > { %p1937_p4 = scmp.ne.s32.totalorder %s402_s18, %s1936_s0  ;;  %p1945_p0 = scmp.lt.s32.totalorder %s1936_s0, %s1936_s0 }
  0xd9   : > { %p1939_p2 = pnand %p1937_p4, %p2709_p9  ;;  %p1946_p12 = por %p1945_p0, %p1944_p7 }
  0xdb   : > { %p1940_p5 = pneg %p1939_p2 }
  0xdd   : > { %p1947_p11 = pnand %p1946_p12, %p1940_p5 }
  0xdf   : > { %1950 = shalt.err (!%p1947_p11)
}
  0xe0   : > { %1596 = dma.hbm_to_vmem [thread:$0]  (!%p2710_p8), %s2652_s6, 64, %s402_s18, [#allocation13]  }
  0xe1   : > { %s1951_s26 = scalar_lea.hbm %s2653_s7, 128 }
  0xe2   : > { %p1952_p1 = scmp.ne.s32.totalorder %s2653_s7, %s1951_s26  ;;  %p1958_p11 = scmp.lt.u32.totalorder %s1951_s26, %s2653_s7 }
  0xe4   : > { %p1954_p3 = pnand %p1952_p1, %p2709_p9 }
  0xe6   : > { %p1955_p6 = pneg %p1954_p3 }
  0xe8   : > { %p1960_p10 = pnand %p1958_p11, %p1955_p6 }
  0xea   : > { %1963 = shalt.err (!%p1960_p10)
}
  0xeb   : > { %s1964_s18 = scalar_lea.vmem %s2451_s20, 128  ;;  %p1972_p5 = scmp.lt.s32.totalorder %s2451_s20, %s2451_s20 }
  0xec   : > { %p1965_p13 = scmp.ne.s32.totalorder %s2451_s20, %s1964_s18  ;;  %p1973_p7 = scmp.lt.s32.totalorder %s1964_s18, %s1964_s18 }
  0xee   : > { %p1967_p4 = pnand %p1965_p13, %p2709_p9  ;;  %p1974_p0 = por %p1973_p7, %p1972_p5 }
  0xf0   : > { %p1968_p2 = pneg %p1967_p4 }
  0xf2   : > { %p1975_p12 = pnand %p1974_p0, %p1968_p2 }
  0xf4   : > { %1978 = shalt.err (!%p1975_p12)
}
  0xf5   : > { %1599 = dma.hbm_to_vmem [thread:$0]  (!%p2710_p8), %s2653_s7, 128, %s2451_s20, [#allocation16]  }
  0xf6   : > { %s2711_s10 = sshll.u32 %s2107_s17, 7  ;;  %s467_s26 = scalar_lea.vmem [#allocation18], %s2368_s24 }
  0xf7   : > { %s2499_s23 = scalar_lea.hbm %s2655_s9, %s2711_s10  ;;  %s475_s22 = sshll.u32 %s467_s26, 4  ;;  %s476_s22 = int_to_ptr.vmem [resolvable:$true] %s475_s22 }
  0xf8   : > { %s1979_s30 = scalar_lea.hbm %s2499_s23, 128  ;;  %p2712_p1 = scmp.ne.s32.totalorder %s2703_s21, 0 }
  0xf9   : > { %p1980_p9 = scmp.ne.s32.totalorder %s2499_s23, %s1979_s30  ;;  %s1984_s28 = scalar_lea.hbm %s2655_s9, 256 }
  0xfa   : > { %p1985_p8 = scmp.lt.u32.totalorder %s2499_s23, %s2655_s9  ;;  %p1986_p11 = scmp.lt.u32.totalorder %s1984_s28, %s1979_s30 }
  0xfb   : > { %p1982_p3 = pnand %p1980_p9, %p2712_p1  ;;  %p1988_p13 = scmp.lt.u32.totalorder %s1979_s30, %s2499_s23 }
  0xfc   : > { %p1987_p10 = por %p1986_p11, %p1985_p8 }
  0xfd   : > { %p1983_p6 = pneg %p1982_p3 }
  0xfe   : > { %p1989_p4 = por %p1988_p13, %p1987_p10 }
 0x100   : > { %p1990_p2 = pnand %p1989_p4, %p1983_p6 }
 0x102   : > { %1993 = shalt.err (!%p1990_p2)
}
 0x103   : > { %s1994_s24 = scalar_lea.vmem %s476_s22, 128  ;;  %s2124_s0 = smov [#allocation18]  }
 0x104   : > { %p1995_p5 = scmp.ne.s32.totalorder %s476_s22, %s1994_s24  ;;  %s1999_s25 = sshll.u32 %s2124_s0, 4  ;;  %s2000_s25 = int_to_ptr.vmem [resolvable:$false] %s1999_s25 }
 0x105   : > { %s2001_s10 = scalar_lea.vmem %s2000_s25, 256  ;;  %p2002_p12 = scmp.lt.s32.totalorder %s476_s22, %s2000_s25 }
 0x106   : > { %p1997_p7 = pnand %p1995_p5, %p2712_p1  ;;  %p2003_p9 = scmp.lt.s32.totalorder %s2001_s10, %s1994_s24 }
 0x108   : > { %p1998_p0 = pneg %p1997_p7  ;;  %p2004_p3 = por %p2003_p9, %p2002_p12 }
 0x10a   : > { %p2005_p8 = pnand %p2004_p3, %p1998_p0 }
 0x10c   : > { %2008 = shalt.err (!%p2005_p8)
}
 0x10d   : > { %p2713_p11 = scmp.ne.s32.totalorder %s2702_s11, 0  ;;  %p2714_p6 = scmp.ne.s32.totalorder %s2698_s29, 0 }
 0x10e   : > { %s2715_s21 = sld [smem:[#allocation28_spill]] (!%p2714_p6)  ;;  %s2716_s14 = sld [smem:[#allocation32_spill]] (!%p2714_p6) }
 0x10f   : > { %1609 = dma.hbm_to_vmem [thread:$0]  (!%p2713_p11), %s2499_s23, 128, %s476_s22, %s2294_s13  }
 0x110   : > { %484 = sbr.rel (%p2714_p6) target bundleno = 1475 (0x5c3), region = 60  ;;  %s486_s27 = sand.u32 (!%p2714_p6), 1, %s2223_s19  }
 0x111   : > { %s487_s16 = scalar_lea.sflag (!%p2714_p6), [#allocation4], %s486_s27 }
 0x114   : > { %s2524_s26 = sand.u32 (!%p2714_p6), 1, %s2715_s21   ;;  %p2717_p1 = scmp.ne.s32.totalorder (!%p2714_p6), %s2716_s14, 0 }
 0x115   : > { %s1476_s30 = sshll.u32 (!%p2714_p6), %s2524_s26, 5 }
 0x116   : > { %s490_s20 = scalar_lea.vmem (!%p2714_p6), [#allocation3], %s1476_s30 }
 0x117   : > { %2062 = dma.done.wait (%p2717_p1), %s487_s16, 512  }
 0x118   : > { %2064 = vsyncadd (%p2717_p1), %s487_s16, 4294966784  ;;  %p2718_p10 = scmp.eq.s32.totalorder %s2223_s19, 0 }
 0x11a   : > { %2066 = dma.done.wait (%p2718_p10), [#allocation7], 256   ;;  %p2719_p13 = pmov %p2718_p10 }
 0x11b   : > { %p2720_p4 = pmov %p2718_p10 }
 0x11c   : > { %2068 = vsyncadd (%p2719_p13), [#allocation7], 4294967040 }
 0x11d   : > { %2070 = dma.done.wait (%p2720_p4), [#allocation10], 256   ;;  %p2721_p2 = pmov %p2720_p4 }
 0x11f   : > { %2072 = vsyncadd (%p2721_p2), [#allocation10], 4294967040  ;;  %p2722_p5 = pmov %p2721_p2 }
 0x120   : > { %p2723_p7 = pmov %p2721_p2 }
 0x121   : > { %2074 = dma.done.wait (%p2722_p5), [#allocation13], 112  }
 0x122   : > { %2076 = vsyncadd (%p2723_p7), [#allocation13], 4294967184  ;;  %p2724_p0 = pmov %p2721_p2 }
 0x124   : > { %2078 = dma.done.wait (%p2724_p0), [#allocation16], 128   ;;  %p2725_p12 = pmov %p2724_p0 }
 0x125   : > { %s1484_s13 = sshll.u32 %s2524_s26, 3 }
 0x126   : > { %2080 = vsyncadd (%p2725_p12), [#allocation16], 4294967168  ;;  %s2550_s29 = scalar_lea.vmem [#allocation17], %s1484_s13 }
 0x127   : > { %2082 = dma.done.wait (%p2717_p1), %s487_s16, 256  }
 0x128   : > { %2084 = vsyncadd (%p2717_p1), %s487_s16, 4294967040  ;;  %v2125_v0 = vmov 0   ;;  %v1700_v1 = vld [vmem:[%s490_s20 + $0x4] ss:$16 sps:$4 sm:$0xff]   ;;  %v1702_v2 = vld [vmem:[%s490_s20] ss:$16 sps:$4 sm:$0xff]  }
 0x129   : > { %786 = vmatprep.subr.bf16.mxu1 %v2125_v0  ;;  %1698 = vset.pattern.permute.xlu0 %v2125_v0  ;;  %s2126_s19 = smov 127   ;;  %v1703_v3 = vld [vmem:[%s490_s20 + $0x8] ss:$16 sps:$4 sm:$0xff]   ;;  %v1705_v4 = vld [vmem:[%s490_s20 + $0xc] ss:$16 sps:$4 sm:$0xff]   ;;  %s2127_s11 = smov 126  }
 0x12a   : > { %1699 = vset.pattern.permute.xlu1 %v2125_v0  ;;  %616 = vrot.lane.b32.xlu0 %v1700_v1, %s2126_s19  ;;  %v1706_v5 = vld [vmem:[%s490_s20 + $0x8] ss:$16 sps:$4 sm:$0xff]   ;;  %s2128_s23 = smov 110   ;;  %s2129_s22 = smov 109   ;;  %v2560_v6 = vld [vmem:[#allocation6] sm:$0xff]  ;;  %vm741_vm0 = vcmask 130048  }
 0x12b   : > { %745 = vmatprep.subr.bf16.mxu0 %v1700_v1  ;;  %614 = vrot.lane.b32.xlu1 %v1702_v2, %s2126_s19  ;;  %s2130_s28 = smov 108   ;;  %s2131_s12 = smov 92   ;;  %v1492_v7 = vcombine.high %v2560_v6, %v2560_v6  ;;  %vm622_vm1 = vcmask 1039360   ;;  %vm637_vm2 = vcmask 1031168   ;;  %vm652_vm3 = vcmask 900096  }
 0x12c   : > { %746 = vmatpush1.bf16.msra.mxu0 %v1702_v2  ;;  %787 = vmatpush1.bf16.msra.mxu1 %v1706_v5  ;;  %s2132_s18 = smov 91   ;;  %s2133_s24 = smov 90   ;;  %vm667_vm4 = vcmask 891904   ;;  %vm682_vm5 = vcmask 883712   ;;  %vm697_vm6 = vcmask 752640   ;;  %vm712_vm7 = vcmask 744448  }
 0x12d   : > { %788 = vmatprep.subr.bf16.mxu1 %v2125_v0  ;;  %1493 = vmatprep.mubr.msk.bf16.mxu0 %vm741_vm0, %v1492_v7  ;;  %vm727_vm8 = vcmask 736256   ;;  %v1491_v63 = vcombine.low %v2560_v6, %v2560_v6  ;;  %v826_v5 = vld [vmem:[#allocation12] sm:$0x7]  ;;  %vm2135_vm9 = vmmov 0   ;;  %vm872_vm10 = vcmask 64512   ;;  %s536_s0 = scalar_lea.vmem [#allocation18], %s1484_s13 }
 0x12e   : > { %618 = vrot.lane.b32.xlu0 %v1703_v3, %s2126_s19  ;;  %1494 = vmatprep.mubr.msk.bf16.mxu1 %vm741_vm0, %v1492_v7  ;;  %vm1021_vm11 = vcmask 1043456   ;;  %vm1017_vm12 = vcmask 31744   ;;  %s2726_s25 = sld [smem:[#allocation29_spill]]  ;;  %s1540_s10 = smul.u32 12, %s2524_s26 }
 0x12f   : > { %620 = vrot.lane.b32.xlu1 %v1705_v4, %s2126_s19  ;;  %s2727_s21 = sld [smem:[#allocation33_spill]] }
 0x130   : > { %s582_s27 = scalar_lea.vmem [#allocation19], %s1540_s10  ;;  %s2728_s13 = sld [smem:[#allocation37_spill]] }
 0x131   : > { %s1259_s30 = sshll.u32 %s582_s27, 4  ;;  %s2599_s30 = int_to_ptr.vmem [resolvable:$true] %s1259_s30 }
 0x132   : > { %631 = vrot.lane.b32.xlu0 %v1700_v1, %s2127_s11 }
 0x133   : > { %633 = vrot.lane.b32.xlu1 %v1703_v3, %s2127_s11 }
 0x134   : > { %s1541_s14 = smul.u32 192, %s2726_s25 }
 0x135   : > { %p2730_p3 = scmp.ne.s32.totalorder %s2727_s21, 0 }
 0x136   : > { %629 = vrot.lane.b32.xlu0 %v1702_v2, %s2127_s11  ;;  %s2597_s19 = scalar_lea.hbm %s2728_s13, %s1541_s14 }
 0x137   : > { %635 = vrot.lane.b32.xlu1 %v1705_v4, %s2127_s11  ;;  %s1243_s11 = scalar_lea.sflag [#allocation5], %s2524_s26 }
 0x13a   : > { %646 = vrot.lane.b32.xlu0 %v1700_v1, %s2128_s23 }
 0x13b   : > { %648 = vrot.lane.b32.xlu1 %v1703_v3, %s2128_s23 }
 0x13e   : > { %644 = vrot.lane.b32.xlu0 %v1702_v2, %s2128_s23 }
 0x13f   : > { %650 = vrot.lane.b32.xlu1 %v1705_v4, %s2128_s23  ;;  %s2009_s23 = scalar_lea.vmem %s2599_s30, 192 }
 0x140   : > { %p2010_p9 = scmp.ne.s32.totalorder %s2599_s30, %s2009_s23 }
 0x142   : > { %661 = vrot.lane.b32.xlu0 %v1700_v1, %s2129_s22  ;;  %p2011_p8 = pnand %p2010_p9, %p2730_p3 }
 0x143   : > { %663 = vrot.lane.b32.xlu1 %v1703_v3, %s2129_s22 }
 0x144   : > { %p2012_p11 = pneg %p2011_p8 }
 0x146   : > { %659 = vrot.lane.b32.xlu0 %v1702_v2, %s2129_s22 }
 0x147   : > { %665 = vrot.lane.b32.xlu1 %v1705_v4, %s2129_s22  ;;  %s2136_s22 = smov [#allocation19]  }
 0x14a   : > { %676 = vrot.lane.b32.xlu0 %v1700_v1, %s2130_s28 }
 0x14b   : > { %678 = vrot.lane.b32.xlu1 %v1703_v3, %s2130_s28 }
 0x14e   : > { %674 = vrot.lane.b32.xlu0 %v1702_v2, %s2130_s28 }
 0x14f   : > { %680 = vrot.lane.b32.xlu1 %v1705_v4, %s2130_s28  ;;  %s2013_s28 = sshll.u32 %s2136_s22, 4  ;;  %s2014_s28 = int_to_ptr.vmem [resolvable:$false] %s2013_s28 }
 0x150   : > { %p2016_p6 = scmp.lt.s32.totalorder %s2599_s30, %s2014_s28 }
 0x152   : > { %691 = vrot.lane.b32.xlu0 %v1700_v1, %s2131_s12 }
 0x153   : > { %693 = vrot.lane.b32.xlu1 %v1703_v3, %s2131_s12 }
 0x156   : > { %689 = vrot.lane.b32.xlu0 %v1702_v2, %s2131_s12 }
 0x157   : > { %695 = vrot.lane.b32.xlu1 %v1705_v4, %s2131_s12  ;;  %s2015_s12 = scalar_lea.vmem %s2014_s28, 384 }
 0x158   : > { %p2017_p1 = scmp.lt.s32.totalorder %s2015_s12, %s2009_s23 }
 0x15a   : > { %706 = vrot.lane.b32.xlu0 %v1700_v1, %s2132_s18  ;;  %p2018_p10 = por %p2017_p1, %p2016_p6 }
 0x15b   : > { %708 = vrot.lane.b32.xlu1 %v1703_v3, %s2132_s18 }
 0x15c   : > { %p2019_p13 = pnand %p2018_p10, %p2012_p11 }
 0x15e   : > { %704 = vrot.lane.b32.xlu0 %v1702_v2, %s2132_s18 }
 0x15f   : > { %710 = vrot.lane.b32.xlu1 %v1705_v4, %s2132_s18 }
 0x162   : > { %721 = vrot.lane.b32.xlu0 %v1700_v1, %s2133_s24 }
 0x163   : > { %723 = vrot.lane.b32.xlu1 %v1703_v3, %s2133_s24 }
 0x166   : > { %719 = vrot.lane.b32.xlu0 %v1702_v2, %s2133_s24  ;;  %v828_v2 = vlaneseq }
 0x167   : > { %725 = vrot.lane.b32.xlu1 %v1705_v4, %s2133_s24 }
 0x168   : > { %v829_v3 = vshrl.u32 %v828_v2, 7 }
 0x16a   : > { %v830_v4 = vsub.s32 0, %v829_v3  ;;  %v838_v7 = vsub.s32 2, %v829_v3 }
 0x19c   : > { %v617_v8 = vpop.permute.xlu0 %616 }
 0x19d   : > { %v615_v9 = vpop.permute.xlu1 %614 }
 0x19e   : > { %v623_v14 = vsel %vm622_vm1, %v615_v9, %v617_v8  ;;  %v839_v9 = vrot.slane %v826_v5, %v838_v7 }
 0x1a0   : > { %v619_v10 = vpop.permute.xlu0 %618 }
 0x1a1   : > { %v621_v11 = vpop.permute.xlu1 %620  ;;  %v624_v12 = vsel %vm622_vm1, %v617_v8, %v619_v10  ;;  %v831_v8 = vrot.slane %v826_v5, %v830_v4 }
 0x1a2   : > { %747 = vmatprep.subr.bf16.mxu0 %v624_v12  ;;  %v625_v13 = vsel %vm622_vm1, %v619_v10, %v621_v11 }
 0x1a3   : > { %789 = vmatpush1.bf16.msra.mxu1 %v625_v13  ;;  %748 = vmatpush1.bf16.msra.mxu0 %v623_v14 }
 0x1a4   : > { %v632_v15 = vpop.permute.xlu0 %631  ;;  %790 = vmatprep.subr.bf16.mxu1 %v2125_v0 }
 0x1a5   : > { %v634_v16 = vpop.permute.xlu1 %633 }
 0x1a6   : > { %v639_v17 = vsel %vm637_vm2, %v632_v15, %v634_v16 }
 0x1a7   : > { %749 = vmatprep.subr.bf16.mxu0 %v639_v17 }
 0x1a8   : > { %v630_v18 = vpop.permute.xlu0 %629 }
 0x1a9   : > { %v636_v19 = vpop.permute.xlu1 %635  ;;  %v638_v20 = vsel %vm637_vm2, %v630_v18, %v632_v15 }
 0x1aa   : > { %750 = vmatpush1.bf16.msra.mxu0 %v638_v20  ;;  %v640_v21 = vsel %vm637_vm2, %v634_v16, %v636_v19 }
 0x1ab   : > { %791 = vmatpush1.bf16.msra.mxu1 %v640_v21 }
 0x1ac   : > { %v647_v22 = vpop.permute.xlu0 %646  ;;  %792 = vmatprep.subr.bf16.mxu1 %v2125_v0 }
 0x1ad   : > { %v649_v23 = vpop.permute.xlu1 %648 }
 0x1ae   : > { %v654_v24 = vsel %vm652_vm3, %v647_v22, %v649_v23 }
 0x1af   : > { %751 = vmatprep.subr.bf16.mxu0 %v654_v24 }
 0x1b0   : > { %v645_v25 = vpop.permute.xlu0 %644 }
 0x1b1   : > { %v651_v26 = vpop.permute.xlu1 %650  ;;  %v653_v27 = vsel %vm652_vm3, %v645_v25, %v647_v22 }
 0x1b2   : > { %752 = vmatpush1.bf16.msra.mxu0 %v653_v27  ;;  %v655_v28 = vsel %vm652_vm3, %v649_v23, %v651_v26 }
 0x1b3   : > { %793 = vmatpush1.bf16.msra.mxu1 %v655_v28  ;;  %v2134_v28 = vmov 0.0  }
 0x1b4   : > { %v662_v29 = vpop.permute.xlu0 %661  ;;  %794 = vmatprep.subr.bf16.mxu1 %v2125_v0 }
 0x1b5   : > { %v664_v30 = vpop.permute.xlu1 %663 }
 0x1b6   : > { %v669_v31 = vsel %vm667_vm4, %v662_v29, %v664_v30 }
 0x1b7   : > { %753 = vmatprep.subr.bf16.mxu0 %v669_v31 }
 0x1b8   : > { %v660_v32 = vpop.permute.xlu0 %659 }
 0x1b9   : > { %v666_v33 = vpop.permute.xlu1 %665  ;;  %v668_v34 = vsel %vm667_vm4, %v660_v32, %v662_v29  ;;  %v862_v29 = vld [vmem:[#allocation8] sm:$0xff] }
 0x1ba   : > { %754 = vmatpush1.bf16.msra.mxu0 %v668_v34  ;;  %v670_v35 = vsel %vm667_vm4, %v664_v30, %v666_v33  ;;  %v863_v30 = vmul.f32 256.0, %v862_v29  ;;  %v865_v31 = vmul.f32 2.0, %v862_v29  ;;  %v868_v32 = vmul.f32 %v862_v29, %v862_v29 }
 0x1bb   : > { %795 = vmatpush1.bf16.msra.mxu1 %v670_v35 }
 0x1bc   : > { %v677_v36 = vpop.permute.xlu0 %676  ;;  %796 = vmatprep.subr.bf16.mxu1 %v2125_v0 }
 0x1bd   : > { %v679_v37 = vpop.permute.xlu1 %678 }
 0x1be   : > { %v684_v38 = vsel %vm682_vm5, %v677_v36, %v679_v37 }
 0x1bf   : > { %755 = vmatprep.subr.bf16.mxu0 %v684_v38 }
 0x1c0   : > { %v675_v39 = vpop.permute.xlu0 %674 }
 0x1c1   : > { %v681_v40 = vpop.permute.xlu1 %680  ;;  %v683_v41 = vsel %vm682_vm5, %v675_v39, %v677_v36  ;;  %v869_v36 = vmul.f32 256.0, %v868_v32 }
 0x1c2   : > { %756 = vmatpush1.bf16.msra.mxu0 %v683_v41  ;;  %v685_v42 = vsel %vm682_vm5, %v679_v37, %v681_v40  ;;  %v871_v37 = vld [vmem:[#allocation14] sm:$0xf]  ;;  %v1016_v41 = vld [vmem:[#allocation15] sm:$0xff] }
 0x1c3   : > { %797 = vmatpush1.bf16.msra.mxu1 %v685_v42 }
 0x1c4   : > { %v692_v43 = vpop.permute.xlu0 %691  ;;  %798 = vmatprep.subr.bf16.mxu1 %v2125_v0 }
 0x1c5   : > { %v694_v44 = vpop.permute.xlu1 %693 }
 0x1c6   : > { %v699_v45 = vsel %vm697_vm6, %v692_v43, %v694_v44 }
 0x1c7   : > { %757 = vmatprep.subr.bf16.mxu0 %v699_v45 }
 0x1c8   : > { %v690_v46 = vpop.permute.xlu0 %689 }
 0x1c9   : > { %v696_v47 = vpop.permute.xlu1 %695  ;;  %v698_v48 = vsel %vm697_vm6, %v690_v46, %v692_v43 }
 0x1ca   : > { %758 = vmatpush1.bf16.msra.mxu0 %v698_v48  ;;  %v700_v49 = vsel %vm697_vm6, %v694_v44, %v696_v47 }
 0x1cb   : > { %799 = vmatpush1.bf16.msra.mxu1 %v700_v49 }
 0x1cc   : > { %v707_v50 = vpop.permute.xlu0 %706  ;;  %800 = vmatprep.subr.bf16.mxu1 %v2125_v0 }
 0x1cd   : > { %v709_v51 = vpop.permute.xlu1 %708 }
 0x1ce   : > { %v714_v52 = vsel %vm712_vm7, %v707_v50, %v709_v51 }
 0x1cf   : > { %759 = vmatprep.subr.bf16.mxu0 %v714_v52 }
 0x1d0   : > { %v705_v53 = vpop.permute.xlu0 %704 }
 0x1d1   : > { %v711_v54 = vpop.permute.xlu1 %710  ;;  %v713_v55 = vsel %vm712_vm7, %v705_v53, %v707_v50 }
 0x1d2   : > { %760 = vmatpush1.bf16.msra.mxu0 %v713_v55  ;;  %v715_v56 = vsel %vm712_vm7, %v709_v51, %v711_v54 }
 0x1d3   : > { %801 = vmatpush1.bf16.msra.mxu1 %v715_v56  ;;  %v1181_v56 = vld [vmem:[%s2550_s29] sm:$0xff]  ;;  %s2729_s29 = smov %s2728_s13 }
 0x1d4   : > { %v722_v57 = vpop.permute.xlu0 %721  ;;  %802 = vmatprep.subr.bf16.mxu1 %v2125_v0  ;;  %v834_v0 = vsub.s32 1, %v829_v3  ;;  %v1185_v3 = vld [vmem:[%s536_s0] sm:$0xff] }
 0x1d5   : > { %v724_v58 = vpop.permute.xlu1 %723 }
 0x1d6   : > { %v729_v59 = vsel %vm727_vm8, %v722_v57, %v724_v58  ;;  %v835_v10 = vrot.slane %v826_v5, %v834_v0 }
 0x1d7   : > { %761 = vmatprep.subr.bf16.mxu0 %v729_v59 }
 0x1d8   : > { %v720_v60 = vpop.permute.xlu0 %719 }
 0x1d9   : > { %v726_v61 = vpop.permute.xlu1 %725  ;;  %v728_v62 = vsel %vm727_vm8, %v720_v60, %v722_v57  ;;  %v1175_v57 = vld [vmem:[#allocation9] sm:$0xff] }
 0x1da   : > { %762 = vmatpush1.bf16.msra.mxu0 %v728_v62  ;;  %v730_v1 = vsel %vm727_vm8, %v724_v58, %v726_v61  ;;  %v1182_v58 = vadd.f32 1.0, %v1181_v56  ;;  %v1179_v62 = vld [vmem:[#allocation11] sm:$0xff] }
 0x1db   : > { %803 = vmatpush1.bf16.msra.mxu1 %v730_v1  ;;  %1520 = vmatprep.subr.mxu0 %v2134_v28 }
 0x1dc   : > { %1525 = vmatprep.subr.mxu1 %v2134_v28 }
 0x1dd   : > { %778 = vmatmul.mubr.bf16.vlgmr.msra.gmra.mrb[0].mxu0 %v1491_v63 }
 0x1de   : > { %819 = vmatmul.mubr.bf16.vlgmr.msra.gmra.mrb[0].mxu1 %v1491_v63  ;;  %1522 = vmatprep.mubr.msk.f32.mxu0 %vm2135_vm9, %v2134_v28 }
 0x1df   : > { %1527 = vmatprep.mubr.msk.f32.mxu1 %vm2135_vm9, %v2134_v28 }
 0x2b0   : > { %v2573_v11 = vpop.f32.mrb[0].mxu0 }
 0x2b1   : > { %v843_v12 = vmul.f32 %v831_v8, %v2573_v11  ;;  %v2576_v13 = vpop.f32.mrb[0].mxu1  ;;  %v2578_v6 = vpop.f32.mrb[1].mxu0 }
 0x2b2   : > { %v845_v14 = vmul.f32 %v839_v9, %v2576_v13  ;;  %v844_v15 = vmul.f32 %v835_v10, %v2578_v6  ;;  %v822_v16 = vpop.f32.mrb[1].mxu1  ;;  %v783_v17 = vpop.f32.mrb[2].mxu0 }
 0x2b3   : > { %v851_v18 = vmul.f32 %v843_v12, %v843_v12  ;;  %v823_v19 = vpop.f32.mrb[2].mxu1  ;;  %v784_v20 = vpop.f32.mrb[3].mxu0 }
 0x2b4   : > { %v852_v21 = vmul.f32 %v844_v15, %v844_v15  ;;  %v824_v22 = vpop.f32.mrb[3].mxu1  ;;  %v846_v23 = vadd.f32 %v844_v15, %v843_v12  ;;  %v853_v24 = vmul.f32 %v845_v14, %v845_v14 }
 0x2b6   : > { %v847_v25 = vadd.f32 %v846_v23, %v845_v14  ;;  %v854_v26 = vadd.f32 %v852_v21, %v851_v18 }
 0x2b8   : > { %848 = vadd.xlane.f32.xlu0 %v847_v25  ;;  %v855_v27 = vadd.f32 %v854_v26, %v853_v24 }
 0x2ba   : > { %856 = vadd.xlane.f32.xlu1 %v855_v27 }
 0x345   : > { %v849_v33 = vpop.xlane.xlu0 %848 }
 0x346   : > { %v864_v34 = vadd.f32 %v863_v30, %v849_v33  ;;  %v866_v35 = vmul.f32 %v865_v31, %v849_v33 }
 0x347   : > { %v857_v38 = vpop.xlane.xlu1 %856 }
 0x348   : > { %v867_v39 = vadd.f32 %v866_v35, %v857_v38  ;;  %1521 = vmatpush3.msra.mxu0 %v864_v34 }
 0x349   : > { %1523 = vmatmul.mubr.msk.f32.vlgmr.msra.gmra.mrb[4].mxu0 %vm872_vm10, %v871_v37  ;;  %1530 = vmatprep.subr.mxu0 %v2134_v28 }
 0x34a   : > { %v870_v40 = vadd.f32 %v869_v36, %v867_v39  ;;  %1532 = vmatprep.mubr.msk.f32.mxu0 %vm2135_vm9, %v2134_v28 }
 0x34c   : > { %1526 = vmatpush3.msra.mxu1 %v870_v40 }
 0x34d   : > { %1528 = vmatmul.mubr.msk.f32.vlgmr.msra.gmra.mrb[4].mxu1 %vm872_vm10, %v871_v37  ;;  %1535 = vmatprep.subr.mxu1 %v2134_v28 }
 0x34e   : > { %1537 = vmatprep.mubr.msk.f32.mxu1 %vm2135_vm9, %v2134_v28 }
 0x41c   : > { %v942_v42 = vpop.f32.mrb[4].mxu0 }
 0x41d   : > { %1531 = vmatpush3.msk.msra.mxu0 %vm1021_vm11, %v942_v42  ;;  %v1524_v43 = vpop.f32.mrb[5].mxu0 }
 0x41e   : > { %1533 = vmatmul.mubr.msk.f32.vlgmr.msra.gmra.mrb[6].mxu0 %vm1017_vm12, %v1016_v41 }
 0x420   : > { %v1012_v44 = vpop.f32.mrb[4].mxu1 }
 0x421   : > { %1536 = vmatpush3.msk.msra.mxu1 %vm1021_vm11, %v1012_v44  ;;  %v1529_v45 = vpop.f32.mrb[5].mxu1 }
 0x422   : > { %1538 = vmatmul.mubr.msk.f32.vlgmr.msra.gmra.mrb[6].mxu1 %vm1017_vm12, %v1016_v41 }
 0x4f1   : > { %v1091_v46 = vpop.f32.mrb[6].mxu0 }
 0x4f2   : > { %v1095_v47 = vmul.f32 0.001953125, %v1091_v46  ;;  %v1534_v48 = vpop.f32.mrb[7].mxu0 }
 0x4f4   : > { %v1170_v49 = vmul.f32 %v1095_v47, %v1095_v47  ;;  %v1177_v60 = vsub.f32 %v862_v29, %v1095_v47 }
 0x4f5   : > { %v1165_v50 = vpop.f32.mrb[6].mxu1 }
 0x4f6   : > { %v1169_v51 = vmul.f32 0.001953125, %v1165_v50  ;;  %v1539_v52 = vpop.f32.mrb[7].mxu1 }
 0x4f8   : > { %v1171_v53 = vsub.f32 %v1169_v51, %v1170_v49 }
 0x4fa   : > { %v1172_v54 = vmax.f32 %v1171_v53, 0.0 }
 0x4fc   : > { %v1173_v55 = vadd.f32 1e-05, %v1172_v54 }
 0x4fe   : > { %1709 = vrsqrt.f32 %v1173_v55 }
 0x508   : > { %v1710_v59 = vpop.eup %1709 }
 0x509   : > { %v1176_v61 = vmul.f32 %v1710_v59, %v1175_v57 }
 0x50b   : > { %v1183_v63 = vmul.f32 %v1182_v58, %v1176_v61  ;;  %v1178_v1 = vmul.f32 %v1177_v60, %v1176_v61 }
 0x50d   : > { %1192 = vperm.xlu0 %1698, %v1183_v63   ;;  %v1180_v2 = vadd.f32 %v1179_v62, %v1178_v1 }
 0x50f   : > { %v1184_v4 = vmul.f32 %v1182_v58, %v1180_v2 }
 0x511   : > { %v1186_v5 = vadd.f32 %v1185_v3, %v1184_v4 }
 0x513   : > { %1200 = vperm.xlu1 %1699, %v1186_v5  }
 0x58c   : > { %v1193_v7 = vpop.permute.xlu0 %1192 }
 0x58d   : > { %v1195_v0 = vmul.f32 %v1193_v7, %v2573_v11  ;;  %v1196_v8 = vmul.f32 %v1193_v7, %v2578_v6  ;;  %v1197_v9 = vmul.f32 %v1193_v7, %v2576_v13 }
 0x592   : > { %v1201_v10 = vpop.permute.xlu1 %1200 }
 0x593   : > { %v1203_v12 = vadd.f32 %v1201_v10, %v1195_v0  ;;  %v1204_v14 = vadd.f32 %v1201_v10, %v1196_v8  ;;  %v1205_v15 = vadd.f32 %v1201_v10, %v1197_v9 }
 0x595   : > { %v1501_v16 = vmul.f32 -1.442695, %v1203_v12  ;;  %v1502_v17 = vmul.f32 -1.442695, %v1204_v14  ;;  %v1503_v18 = vmul.f32 -1.442695, %v1205_v15 }
 0x597   : > { %1711 = vpow2.f32 %v1501_v16 }
 0x598   : > { %1713 = vpow2.f32 %v1502_v17 }
 0x599   : > { %1715 = vpow2.f32 %v1503_v18 }
 0x5a1   : > { %v1712_v19 = vpop.eup %1711 }
 0x5a2   : > { %v1714_v20 = vpop.eup %1713  ;;  %v1215_v21 = vadd.f32 1.0, %v1712_v19 }
 0x5a3   : > { %v1716_v11 = vpop.eup %1715  ;;  %v1216_v22 = vadd.f32 1.0, %v1714_v20 }
 0x5a4   : > { %v1217_v6 = vadd.f32 1.0, %v1716_v11  ;;  %1717 = vrcp.f32 %v1215_v21 }
 0x5a5   : > { %1719 = vrcp.f32 %v1216_v22 }
 0x5a6   : > { %1721 = vrcp.f32 %v1217_v6 }
 0x5ae   : > { %v1718_v13 = vpop.eup %1717 }
 0x5af   : > { %v1720_v23 = vpop.eup %1719  ;;  %v1224_v24 = vmul.f32 %v1718_v13, %v1203_v12 }
 0x5b0   : > { %v1722_v25 = vpop.eup %1721  ;;  %v1225_v26 = vmul.f32 %v1720_v23, %v1204_v14 }
 0x5b1   : > { %v1226_v27 = vmul.f32 %v1722_v25, %v1205_v15 }
 0x5b2   : > { %v1510_v28 = vpack.c.bf16 %v1225_v26, %v1224_v24 }
 0x5b3   : > { %v1511_v29 = vpack.c.bf16 %v1226_v27, %v1226_v27 }
 0x5b4   : > { %1240 = vst [vmem:[%s582_s27] sm:$0xff] %v1510_v28 }
 0x5b5   : > { %1241 = vst [vmem:[%s582_s27 + $0x8] sm:$0xf] %v1511_v29 }
 0x5b6   : > { %2022 = shalt.err (!%p2019_p13)
}
 0x5b7   : > { %s2023_s26 = scalar_lea.hbm %s2597_s19, 192  ;;  %s2027_s0 = scalar_lea.hbm %s2729_s29, 384 }
 0x5b8   : > { %p2024_p4 = scmp.ne.s32.totalorder %s2597_s19, %s2023_s26  ;;  %p2028_p7 = scmp.lt.u32.totalorder %s2597_s19, %s2729_s29 }
 0x5b9   : > { %p2029_p0 = scmp.lt.u32.totalorder %s2027_s0, %s2023_s26  ;;  %p2031_p9 = scmp.lt.u32.totalorder %s2023_s26, %s2597_s19 }
 0x5ba   : > { %p2025_p2 = pnand %p2024_p4, %p2730_p3 }
 0x5bb   : > { %p2030_p12 = por %p2029_p0, %p2028_p7 }
 0x5bc   : > { %p2026_p5 = pneg %p2025_p2 }
 0x5bd   : > { %p2032_p8 = por %p2031_p9, %p2030_p12 }
 0x5bf   : > { %p2033_p11 = pnand %p2032_p8, %p2026_p5 }
 0x5c1   : > { %2036 = shalt.err (!%p2033_p11)
}
 0x5c2   : > { %1576 = dma.vmem_to_hbm [thread:$0]  (%p2730_p3), %s2599_s30, 192, %s2597_s19, %s1243_s11  }
 0x5c3 PF: > { %s2731_s14 = sld [smem:[#allocation27_spill]]  ;;  %s2732_s27 = sld [smem:[#allocation35_spill]] }
 0x5c4   : > { %s2733_s16 = sld [smem:[#allocation30_spill]] }
 0x5c9   : > { %s1271_s20 = sand.u32 1, %s2731_s14   ;;  %p2734_p6 = scmp.ne.s32.totalorder %s2732_s27, 0 }
 0x5ca   : > { %p2735_p1 = scmp.ge.s32.totalorder %s2733_s16, 2  ;;  %s1272_s13 = scalar_lea.sflag [#allocation5], %s1271_s20 }
 0x5cc   : > { %p1611_p10 = pnand %p2735_p1, %p2734_p6 }
 0x5ce   : > { %2086 = dma.done.wait (!%p1611_p10), %s1272_s13, 192  }
 0x5cf   : > { %2088 = vsyncadd (!%p1611_p10), %s1272_s13, 4294967104  ;;  %s30_s18 = sadd.s32 1, %s2733_s16   ;;  %s2736_s13 = sld [smem:[#allocation28_spill]] }
 0x5d0   : > { %p27_p13 = scmp.ge.s32.totalorder %s30_s18, 4   ;;  %s2737_s21 = sld [smem:[#allocation34_spill]] }
 0x5d1   : > { %s2738_s23 = sld [smem:[#allocation31_spill]]  ;;  %s2739_s14 = smov %s2099_s15 }
 0x5d2   : > { %s2741_s16 = smov %s2107_s17  ;;  %29 = sbr.rel (!%p27_p13) target bundleno = 13 (0xd), region = 159 }
 0x5d6   : > { %s2740_s15 = smov %s2737_s21 }
 0x5d7   : > { %s2742_s17 = smov %s2738_s23 }
 0x5d9   :  { %1277 = vsyncpa [#allocation4], 1 }
 0x5da   :  { %1279 = vsyncpa [#allocation4 + $0x1], 1 }
 0x5db   :  { %1280 = vsyncpa [#allocation7], 1 }
 0x5dc   :  { %1281 = vsyncpa [#allocation10], 1 }
 0x5dd   :  { %1282 = vsyncpa [#allocation13], 1 }
 0x5de   :  { %1283 = vsyncpa [#allocation16], 1 }
 0x5df   :  { %1284 = vsyncpa [#allocation5], 1 }
 0x5e0   :  { %1286 = vsyncpa [#allocation5 + $0x1], 1 }

</bundles_post_ra>
